<compile_context>
chip_gen: v7x
topology: tpu7x:2x2x1
jax: 0.10.0
libtpu: 0.0.40
codegen_flags: <defaults>
</compile_context>

<pallas_src>
import functools

import jax
import jax.numpy as jnp
from jax import lax
from jax.experimental import pallas as pl
from jax.experimental.pallas import tpu as pltpu

EPS = 1e-5


def _round_up(x, m):
    return (x + m - 1) // m * m


def _double_conv_kernel(x_ref, mask_ref, w1_ref, g1_ref, be1_ref,
                        w2_ref, g2_ref, be2_ref, out_ref, p2_ref,
                        *, N, H, W, Cout, inv_nhw):
    f32 = jnp.float32
    Hp, Wp = H + 2, W + 2
    L = N * Hp * Wp                      # extended output columns (valid + halo)
    tot = p2_ref.shape[1]                # padded-flat columns incl. tail slack

    mask = mask_ref[...]                 # (1, L): 1.0 on true image pixels

    def conv_bn_relu(src_ref, w_ref, g_ref, be_ref):
        # 3x3 conv as ONE matmul: the im2col patch is built from 9 contiguous
        # (static-offset) lane slices of the flattened zero-padded image,
        # then a single (Cout, 9*C) x (9*C, L) MXU dot -> lane-dense (Cout,L).
        taps = []
        for dy in range(3):
            for dx in range(3):
                taps.append(src_ref[:, pl.ds(dy * Wp + dx, L)])
        patch = jnp.concatenate(taps, axis=0)                     # (9*C, L)
        acc = jnp.dot(w_ref[...], patch, preferred_element_type=f32)

        # Training-mode BatchNorm over the valid (N,H,W) positions only,
        # single pass over acc: var = E[x^2] - mean^2.
        s1 = jnp.sum(acc * mask, axis=1, keepdims=True)           # (Cout, 1)
        s2 = jnp.sum(acc * acc * mask, axis=1, keepdims=True)
        mean = s1 * inv_nhw
        var = s2 * inv_nhw - mean * mean
        y = (acc - mean) * lax.rsqrt(var + EPS) * g_ref[...] + be_ref[...]
        return jnp.maximum(y, 0.0)                                # (Cout, L)

    # ---- conv1 + BN + ReLU (input already zero-padded & flattened) --------
    h1 = conv_bn_relu(x_ref, w1_ref, g1_ref, be1_ref)

    # ---- stage h1 as the zero-padded flat input of conv2 -------------------
    # Image pixel (y, x) sits at extended column y*Wp + x of h1 and must land
    # at padded column (y+1)*Wp + (x+1) of p2: a uniform +(Wp+1) lane shift.
    # Multiplying by `mask` zeroes every halo column inside the shifted range,
    # so only the small head/tail halo needs an explicit memset.
    shift = Wp + 1
    p2_ref[:, pl.ds(0, shift)] = jnp.zeros((Cout, shift), f32)
    p2_ref[:, pl.ds(shift, L)] = h1 * mask
    tail = tot - (shift + L)
    p2_ref[:, pl.ds(shift + L, tail)] = jnp.zeros((Cout, tail), f32)

    # ---- conv2 + BN + ReLU --------------------------------------------------
    h2 = conv_bn_relu(p2_ref, w2_ref, g2_ref, be2_ref)

    # Lane-dense writeback: (Cout, L) straight out, no relayout needed.
    out_ref[...] = h2


@jax.jit
def double_conv(x_nchw, w1, b1, g1, be1, w2, b2, g2, be2):
    """x_nchw: (N, Cin, H, W). Conv weights HWIO. Returns (N, Cout, H, W)."""
    # b1/b2 accepted for interface parity with nn.Conv2d(bias=True), but a
    # per-channel constant bias is exactly cancelled by the batch-stat
    # BatchNorm that follows -> dropping it from the kernel is a numerical
    # no-op.
    del b1, b2

    x = x_nchw.astype(jnp.float32)
    N, Cin, H, W = x.shape
    Cout = w1.shape[-1]
    Hp, Wp = H + 2, W + 2
    L = N * Hp * Wp
    tot = _round_up(L + 2 * Wp + 2, 128)   # tail slack keeps tap slices in-bounds

    # Zero-pad (padding=1) once on the HBM side and flatten (n, y, x) onto the
    # LANE axis with channels on sublanes; the kernel never re-pads conv1.
    x_pad = jnp.pad(x, ((0, 0), (0, 0), (1, 1), (1, 1)))          # (N,Cin,Hp,Wp)
    x_flat = jnp.transpose(x_pad, (1, 0, 2, 3)).reshape(Cin, L)
    x_flat = jnp.pad(x_flat, ((0, 0), (0, tot - L)))              # (Cin, tot)

    # Validity mask of the extended (Hp, Wp) grid: 1.0 on true image pixels.
    m = ((jnp.arange(Hp) < H)[:, None] & (jnp.arange(Wp) < W)[None, :])
    mask = jnp.tile(m.astype(jnp.float32)[None], (N, 1, 1)).reshape(1, L)

    # Fuse the 9 taps into the contraction dimension of a single matmul:
    # w[o, (dy*3+dx)*C + c] = w_hwio[dy, dx, c, o].
    w1m = jnp.transpose(w1.astype(jnp.float32), (3, 0, 1, 2)).reshape(Cout, 9 * Cin)
    w2m = jnp.transpose(w2.astype(jnp.float32), (3, 0, 1, 2)).reshape(Cout, 9 * Cout)

    kernel = functools.partial(_double_conv_kernel, N=N, H=H, W=W,
                               Cout=Cout, inv_nhw=1.0 / (N * H * W))
    vmem = pl.BlockSpec(memory_space=pltpu.MemorySpace.VMEM)
    out2d = pl.pallas_call(
        kernel,
        out_shape=jax.ShapeDtypeStruct((Cout, L), jnp.float32),
        in_specs=[vmem] * 8,
        out_specs=vmem,
        scratch_shapes=[pltpu.VMEM((Cout, tot), jnp.float32)],
        compiler_params=pltpu.CompilerParams(
            vmem_limit_bytes=32 * 1024 * 1024),
    )(x_flat, mask, w1m, g1.reshape(Cout, 1), be1.reshape(Cout, 1),
      w2m, g2.reshape(Cout, 1), be2.reshape(Cout, 1))

    # Strip the halo columns/rows and restore NCHW in the wrapper.
    out = out2d.reshape(Cout, N, Hp, Wp)[:, :, :H, :W]
    return jnp.transpose(out, (1, 0, 2, 3))                       # (N,Cout,H,W)


def _reference(x_nchw, w1, b1, g1, be1, w2, b2, g2, be2):
    """Pure-JAX reference (NCHW, lax.conv) mirroring the PyTorch forward."""
    def block(x, w_hwio, b, g, be):
        w_oihw = jnp.transpose(w_hwio, (3, 2, 0, 1))
        y = lax.conv_general_dilated(
            x, w_oihw, window_strides=(1, 1), padding=((1, 1), (1, 1)),
            dimension_numbers=("NCHW", "OIHW", "NCHW"))
        y = y + b.reshape(1, -1, 1, 1)
        mean = jnp.mean(y, axis=(0, 2, 3), keepdims=True)
        var = jnp.mean((y - mean) ** 2, axis=(0, 2, 3), keepdims=True)
        y = (y - mean) * lax.rsqrt(var + EPS)
        y = y * g.reshape(1, -1, 1, 1) + be.reshape(1, -1, 1, 1)
        return jnp.maximum(y, 0.0)

    h = block(x_nchw, w1, b1.reshape(-1), g1.reshape(-1), be1.reshape(-1))
    return block(h, w2, b2.reshape(-1), g2.reshape(-1), be2.reshape(-1))


if __name__ == "__main__":
    N, Cin, Cout, H, W = 2, 4, 8, 16, 16

    key = jax.random.PRNGKey(0)
    kx, kw1, kb1, kw2, kb2 = jax.random.split(key, 5)

    x = jax.random.normal(kx, (N, Cin, H, W), dtype=jnp.float32)

    # Conv weights generated in PyTorch OIHW layout then converted to HWIO.
    w1_oihw = jax.random.normal(kw1, (Cout, Cin, 3, 3), jnp.float32) * 0.1
    w2_oihw = jax.random.normal(kw2, (Cout, Cout, 3, 3), jnp.float32) * 0.1
    w1 = jnp.transpose(w1_oihw, (2, 3, 1, 0))  # (3,3,Cin,Cout)
    w2 = jnp.transpose(w2_oihw, (2, 3, 1, 0))  # (3,3,Cout,Cout)
    b1 = jax.random.normal(kb1, (1, Cout), jnp.float32) * 0.1
    b2 = jax.random.normal(kb2, (1, Cout), jnp.float32) * 0.1
    g1 = jnp.ones((1, Cout), jnp.float32)    # BatchNorm gamma init
    be1 = jnp.zeros((1, Cout), jnp.float32)  # BatchNorm beta init
    g2 = jnp.ones((1, Cout), jnp.float32)
    be2 = jnp.zeros((1, Cout), jnp.float32)

    out = double_conv(x, w1, b1, g1, be1, w2, b2, g2, be2)
    out = jax.block_until_ready(out)

    ref = _reference(x, w1, b1, g1, be1, w2, b2, g2, be2)
    assert out.shape == (N, Cout, H, W)
    assert jnp.allclose(out, ref, rtol=1e-4, atol=1e-4), (
        float(jnp.max(jnp.abs(out - ref))))

    print("KERNEL_OK")
</pallas_src>

<mosaic_0001>
module attributes {stable_mosaic.version = 11 : i64} {
  func.func @_double_conv_kernel(%arg0: memref<4x768xf32, #tpu.memory_space<vmem>>, %arg1: memref<1x648xf32, #tpu.memory_space<vmem>>, %arg2: memref<8x36xf32, #tpu.memory_space<vmem>>, %arg3: memref<8x1xf32, #tpu.memory_space<vmem>>, %arg4: memref<8x1xf32, #tpu.memory_space<vmem>>, %arg5: memref<8x72xf32, #tpu.memory_space<vmem>>, %arg6: memref<8x1xf32, #tpu.memory_space<vmem>>, %arg7: memref<8x1xf32, #tpu.memory_space<vmem>>, %arg8: memref<8x648xf32, #tpu.memory_space<vmem>>, %arg9: memref<8x768xf32, #tpu.memory_space<vmem>>) attributes {dimension_semantics = [], scalar_prefetch = 0 : i64, scratch_operands = 1 : i64, tpu.core_type = #tpu.core_type<tc>} {
    %c0 = arith.constant 0 : index
    %c0_0 = arith.constant 0 : index
    %0 = vector.load %arg1[%c0, %c0_0] : memref<1x648xf32, #tpu.memory_space<vmem>>, vector<1x648xf32>
    %c0_1 = arith.constant 0 : index
    %c0_2 = arith.constant 0 : index
    %1 = vector.load %arg0[%c0_1, %c0_2] : memref<4x768xf32, #tpu.memory_space<vmem>>, vector<4x648xf32>
    %c0_3 = arith.constant 0 : index
    %c1 = arith.constant 1 : index
    %2 = vector.load %arg0[%c0_3, %c1] : memref<4x768xf32, #tpu.memory_space<vmem>>, vector<4x648xf32>
    %c0_4 = arith.constant 0 : index
    %c2 = arith.constant 2 : index
    %3 = vector.load %arg0[%c0_4, %c2] : memref<4x768xf32, #tpu.memory_space<vmem>>, vector<4x648xf32>
    %c0_5 = arith.constant 0 : index
    %c18 = arith.constant 18 : index
    %4 = vector.load %arg0[%c0_5, %c18] : memref<4x768xf32, #tpu.memory_space<vmem>>, vector<4x648xf32>
    %c0_6 = arith.constant 0 : index
    %c19 = arith.constant 19 : index
    %5 = vector.load %arg0[%c0_6, %c19] : memref<4x768xf32, #tpu.memory_space<vmem>>, vector<4x648xf32>
    %c0_7 = arith.constant 0 : index
    %c20 = arith.constant 20 : index
    %6 = vector.load %arg0[%c0_7, %c20] : memref<4x768xf32, #tpu.memory_space<vmem>>, vector<4x648xf32>
    %c0_8 = arith.constant 0 : index
    %c36 = arith.constant 36 : index
    %7 = vector.load %arg0[%c0_8, %c36] : memref<4x768xf32, #tpu.memory_space<vmem>>, vector<4x648xf32>
    %c0_9 = arith.constant 0 : index
    %c37 = arith.constant 37 : index
    %8 = vector.load %arg0[%c0_9, %c37] : memref<4x768xf32, #tpu.memory_space<vmem>>, vector<4x648xf32>
    %c0_10 = arith.constant 0 : index
    %c38 = arith.constant 38 : index
    %9 = vector.load %arg0[%c0_10, %c38] : memref<4x768xf32, #tpu.memory_space<vmem>>, vector<4x648xf32>
    %10 = tpu.concatenate %1, %2, %3, %4, %5, %6, %7, %8, %9 in 0 : vector<4x648xf32>, vector<4x648xf32>, vector<4x648xf32>, vector<4x648xf32>, vector<4x648xf32>, vector<4x648xf32>, vector<4x648xf32>, vector<4x648xf32>, vector<4x648xf32> -> vector<36x648xf32>
    %c0_11 = arith.constant 0 : index
    %c0_12 = arith.constant 0 : index
    %11 = vector.load %arg2[%c0_11, %c0_12] : memref<8x36xf32, #tpu.memory_space<vmem>>, vector<8x36xf32>
    %cst = arith.constant dense<0.000000e+00> : vector<8x648xf32>
    %12 = tpu.matmul %11, %10, %cst {dimension_numbers = #tpu.dot_dimension_numbers<[1], [0], [0], [1], [0, 0, 1, 1], [], []>} : vector<8x36xf32>, vector<36x648xf32>, vector<8x648xf32> -> vector<8x648xf32>
    %13 = vector.broadcast %0 : vector<1x648xf32> to vector<8x648xf32>
    %14 = arith.mulf %12, %13 : vector<8x648xf32>
    %cst_13 = arith.constant dense<0.000000e+00> : vector<8xf32>
    %15 = vector.multi_reduction <add>, %14, %cst_13 [1] : vector<8x648xf32> to vector<8xf32>
    %16 = vector.shape_cast %15 : vector<8xf32> to vector<8x1xf32>
    %17 = arith.mulf %12, %12 : vector<8x648xf32>
    %18 = vector.broadcast %0 : vector<1x648xf32> to vector<8x648xf32>
    %19 = arith.mulf %17, %18 : vector<8x648xf32>
    %cst_14 = arith.constant dense<0.000000e+00> : vector<8xf32>
    %20 = vector.multi_reduction <add>, %19, %cst_14 [1] : vector<8x648xf32> to vector<8xf32>
    %21 = vector.shape_cast %20 : vector<8xf32> to vector<8x1xf32>
    %cst_15 = arith.constant 0.001953125 : f32
    %22 = vector.broadcast %cst_15 : f32 to vector<8x1xf32>
    %23 = arith.mulf %16, %22 : vector<8x1xf32>
    %cst_16 = arith.constant 0.001953125 : f32
    %24 = vector.broadcast %cst_16 : f32 to vector<8x1xf32>
    %25 = arith.mulf %21, %24 : vector<8x1xf32>
    %26 = arith.mulf %23, %23 : vector<8x1xf32>
    %27 = arith.subf %25, %26 : vector<8x1xf32>
    %28 = vector.broadcast %23 : vector<8x1xf32> to vector<8x648xf32>
    %29 = arith.subf %12, %28 : vector<8x648xf32>
    %cst_17 = arith.constant 9.99999974E-6 : f32
    %30 = vector.broadcast %cst_17 : f32 to vector<8x1xf32>
    %31 = arith.addf %27, %30 : vector<8x1xf32>
    %32 = math.rsqrt %31 : vector<8x1xf32>
    %33 = vector.broadcast %32 : vector<8x1xf32> to vector<8x648xf32>
    %34 = arith.mulf %29, %33 : vector<8x648xf32>
    %c0_18 = arith.constant 0 : index
    %c0_19 = arith.constant 0 : index
    %35 = vector.load %arg3[%c0_18, %c0_19] : memref<8x1xf32, #tpu.memory_space<vmem>>, vector<8x1xf32>
    %36 = vector.broadcast %35 : vector<8x1xf32> to vector<8x648xf32>
    %37 = arith.mulf %34, %36 : vector<8x648xf32>
    %c0_20 = arith.constant 0 : index
    %c0_21 = arith.constant 0 : index
    %38 = vector.load %arg4[%c0_20, %c0_21] : memref<8x1xf32, #tpu.memory_space<vmem>>, vector<8x1xf32>
    %39 = vector.broadcast %38 : vector<8x1xf32> to vector<8x648xf32>
    %40 = arith.addf %37, %39 : vector<8x648xf32>
    %cst_22 = arith.constant 0.000000e+00 : f32
    %41 = vector.broadcast %cst_22 : f32 to vector<8x648xf32>
    %42 = arith.maximumf %40, %41 : vector<8x648xf32>
    %cst_23 = arith.constant 0.000000e+00 : f32
    %43 = vector.broadcast %cst_23 : f32 to vector<8x19xf32>
    %c0_24 = arith.constant 0 : index
    %c0_25 = arith.constant 0 : index
    %44 = vector.load %arg9[%c0_24, %c0_25] : memref<8x768xf32, #tpu.memory_space<vmem>>, vector<8x19xf32>
    tpu.vector_store %arg9[%c0_24, %c0_25], %43 {strides = array<i32>} : memref<8x768xf32, #tpu.memory_space<vmem>>, vector<8x19xf32>,
    %45 = vector.broadcast %0 : vector<1x648xf32> to vector<8x648xf32>
    %46 = arith.mulf %42, %45 : vector<8x648xf32>
    %c0_26 = arith.constant 0 : index
    %c19_27 = arith.constant 19 : index
    %47 = vector.load %arg9[%c0_26, %c19_27] : memref<8x768xf32, #tpu.memory_space<vmem>>, vector<8x648xf32>
    tpu.vector_store %arg9[%c0_26, %c19_27], %46 {strides = array<i32>} : memref<8x768xf32, #tpu.memory_space<vmem>>, vector<8x648xf32>,
    %cst_28 = arith.constant 0.000000e+00 : f32
    %48 = vector.broadcast %cst_28 : f32 to vector<8x101xf32>
    %c0_29 = arith.constant 0 : index
    %c667 = arith.constant 667 : index
    %49 = vector.load %arg9[%c0_29, %c667] : memref<8x768xf32, #tpu.memory_space<vmem>>, vector<8x101xf32>
    tpu.vector_store %arg9[%c0_29, %c667], %48 {strides = array<i32>} : memref<8x768xf32, #tpu.memory_space<vmem>>, vector<8x101xf32>,
    %c0_30 = arith.constant 0 : index
    %c0_31 = arith.constant 0 : index
    %50 = vector.load %arg9[%c0_30, %c0_31] : memref<8x768xf32, #tpu.memory_space<vmem>>, vector<8x648xf32>
    %c0_32 = arith.constant 0 : index
    %c1_33 = arith.constant 1 : index
    %51 = vector.load %arg9[%c0_32, %c1_33] : memref<8x768xf32, #tpu.memory_space<vmem>>, vector<8x648xf32>
    %c0_34 = arith.constant 0 : index
    %c2_35 = arith.constant 2 : index
    %52 = vector.load %arg9[%c0_34, %c2_35] : memref<8x768xf32, #tpu.memory_space<vmem>>, vector<8x648xf32>
    %c0_36 = arith.constant 0 : index
    %c18_37 = arith.constant 18 : index
    %53 = vector.load %arg9[%c0_36, %c18_37] : memref<8x768xf32, #tpu.memory_space<vmem>>, vector<8x648xf32>
    %c0_38 = arith.constant 0 : index
    %c19_39 = arith.constant 19 : index
    %54 = vector.load %arg9[%c0_38, %c19_39] : memref<8x768xf32, #tpu.memory_space<vmem>>, vector<8x648xf32>
    %c0_40 = arith.constant 0 : index
    %c20_41 = arith.constant 20 : index
    %55 = vector.load %arg9[%c0_40, %c20_41] : memref<8x768xf32, #tpu.memory_space<vmem>>, vector<8x648xf32>
    %c0_42 = arith.constant 0 : index
    %c36_43 = arith.constant 36 : index
    %56 = vector.load %arg9[%c0_42, %c36_43] : memref<8x768xf32, #tpu.memory_space<vmem>>, vector<8x648xf32>
    %c0_44 = arith.constant 0 : index
    %c37_45 = arith.constant 37 : index
    %57 = vector.load %arg9[%c0_44, %c37_45] : memref<8x768xf32, #tpu.memory_space<vmem>>, vector<8x648xf32>
    %c0_46 = arith.constant 0 : index
    %c38_47 = arith.constant 38 : index
    %58 = vector.load %arg9[%c0_46, %c38_47] : memref<8x768xf32, #tpu.memory_space<vmem>>, vector<8x648xf32>
    %59 = tpu.concatenate %50, %51, %52, %53, %54, %55, %56, %57, %58 in 0 : vector<8x648xf32>, vector<8x648xf32>, vector<8x648xf32>, vector<8x648xf32>, vector<8x648xf32>, vector<8x648xf32>, vector<8x648xf32>, vector<8x648xf32>, vector<8x648xf32> -> vector<72x648xf32>
    %c0_48 = arith.constant 0 : index
    %c0_49 = arith.constant 0 : index
    %60 = vector.load %arg5[%c0_48, %c0_49] : memref<8x72xf32, #tpu.memory_space<vmem>>, vector<8x72xf32>
    %cst_50 = arith.constant dense<0.000000e+00> : vector<8x648xf32>
    %61 = tpu.matmul %60, %59, %cst_50 {dimension_numbers = #tpu.dot_dimension_numbers<[1], [0], [0], [1], [0, 0, 1, 1], [], []>} : vector<8x72xf32>, vector<72x648xf32>, vector<8x648xf32> -> vector<8x648xf32>
    %62 = vector.broadcast %0 : vector<1x648xf32> to vector<8x648xf32>
    %63 = arith.mulf %61, %62 : vector<8x648xf32>
    %cst_51 = arith.constant dense<0.000000e+00> : vector<8xf32>
    %64 = vector.multi_reduction <add>, %63, %cst_51 [1] : vector<8x648xf32> to vector<8xf32>
    %65 = vector.shape_cast %64 : vector<8xf32> to vector<8x1xf32>
    %66 = arith.mulf %61, %61 : vector<8x648xf32>
    %67 = vector.broadcast %0 : vector<1x648xf32> to vector<8x648xf32>
    %68 = arith.mulf %66, %67 : vector<8x648xf32>
    %cst_52 = arith.constant dense<0.000000e+00> : vector<8xf32>
    %69 = vector.multi_reduction <add>, %68, %cst_52 [1] : vector<8x648xf32> to vector<8xf32>
    %70 = vector.shape_cast %69 : vector<8xf32> to vector<8x1xf32>
    %cst_53 = arith.constant 0.001953125 : f32
    %71 = vector.broadcast %cst_53 : f32 to vector<8x1xf32>
    %72 = arith.mulf %65, %71 : vector<8x1xf32>
    %cst_54 = arith.constant 0.001953125 : f32
    %73 = vector.broadcast %cst_54 : f32 to vector<8x1xf32>
    %74 = arith.mulf %70, %73 : vector<8x1xf32>
    %75 = arith.mulf %72, %72 : vector<8x1xf32>
    %76 = arith.subf %74, %75 : vector<8x1xf32>
    %77 = vector.broadcast %72 : vector<8x1xf32> to vector<8x648xf32>
    %78 = arith.subf %61, %77 : vector<8x648xf32>
    %cst_55 = arith.constant 9.99999974E-6 : f32
    %79 = vector.broadcast %cst_55 : f32 to vector<8x1xf32>
    %80 = arith.addf %76, %79 : vector<8x1xf32>
    %81 = math.rsqrt %80 : vector<8x1xf32>
    %82 = vector.broadcast %81 : vector<8x1xf32> to vector<8x648xf32>
    %83 = arith.mulf %78, %82 : vector<8x648xf32>
    %c0_56 = arith.constant 0 : index
    %c0_57 = arith.constant 0 : index
    %84 = vector.load %arg6[%c0_56, %c0_57] : memref<8x1xf32, #tpu.memory_space<vmem>>, vector<8x1xf32>
    %85 = vector.broadcast %84 : vector<8x1xf32> to vector<8x648xf32>
    %86 = arith.mulf %83, %85 : vector<8x648xf32>
    %c0_58 = arith.constant 0 : index
    %c0_59 = arith.constant 0 : index
    %87 = vector.load %arg7[%c0_58, %c0_59] : memref<8x1xf32, #tpu.memory_space<vmem>>, vector<8x1xf32>
    %88 = vector.broadcast %87 : vector<8x1xf32> to vector<8x648xf32>
    %89 = arith.addf %86, %88 : vector<8x648xf32>
    %cst_60 = arith.constant 0.000000e+00 : f32
    %90 = vector.broadcast %cst_60 : f32 to vector<8x648xf32>
    %91 = arith.maximumf %89, %90 : vector<8x648xf32>
    %c0_61 = arith.constant 0 : index
    %c0_62 = arith.constant 0 : index
    %92 = vector.load %arg8[%c0_61, %c0_62] : memref<8x648xf32, #tpu.memory_space<vmem>>, vector<8x648xf32>
    tpu.vector_store %arg8[%c0_61, %c0_62], %91 {strides = array<i32>} : memref<8x648xf32, #tpu.memory_space<vmem>>, vector<8x648xf32>,
    return
  }
}

</mosaic_0001>

<bundles_post_ra>
// kernel: tile.6
= control target key start
LH: loop header
LB: loop body
LE: loop exit
PB: predicated region body
PF: predicated region fallthrough
CT: control target
= control target key end

     0   :  { %s64_s0 = inlined_call_operand.vmem [shape: f32[18,18], index: 0, kind: input, shape index: {}]   ;;  %s65_s1 = inlined_call_operand.vmem [shape: f32[2,1,1,18,1,18], index: 1, kind: output, shape index: {}]  }
   0x1   :  { %v4_v0 = vld [vmem:[%s64_s0] sm:$0xff]  ;;  %v21_v1 = vld [vmem:[%s64_s0 + $0x8] sm:$0xff]  ;;  %v24_v2 = vld [vmem:[%s64_s0 + $0x10] sm:$0xff] }
   0x2   :  { %5 = vst [vmem:[%s65_s1] sm:$0xff] %v4_v0  ;;  %20 = vst [vmem:[%s65_s1 + $0x18] sm:$0xff] %v4_v0 }
   0x3   :  { %22 = vst [vmem:[%s65_s1 + $0x8] sm:$0xff] %v21_v1  ;;  %23 = vst [vmem:[%s65_s1 + $0x20] sm:$0xff] %v21_v1 }
   0x4   :  { %25 = vst [vmem:[%s65_s1 + $0x10] sm:$0xff] %v24_v2  ;;  %26 = vst [vmem:[%s65_s1 + $0x28] sm:$0xff] %v24_v2 }

// kernel: tile.7
= control target key start
LH: loop header
LB: loop body
LE: loop exit
PB: predicated region body
PF: predicated region fallthrough
CT: control target
= control target key end

     0   :  { %vm9_vm0 = vcmask 15360   ;;  %vm36_vm1 = vcmask 48128   ;;  %s397_s14 = smov 126   ;;  %vm22_vm2 = vcmask 31744   ;;  %s398_s19 = smov 122   ;;  %vm50_vm3 = vcmask 64512   ;;  %s587_s0 = inlined_call_operand.vmem [shape: f32[2,1,1,18,1,18], index: 0, kind: input, shape index: {}]   ;;  %s588_s1 = inlined_call_operand.vmem [shape: f32[1,648], index: 1, kind: output, shape index: {}]  }
   0x1   :  { %v317_v0 = vld [vmem:[%s587_s0 + $0x7] sm:$0x1]   ;;  %v321_v3 = vld [vmem:[%s587_s0 + $0x1b] sm:$0x1]   ;;  %v319_v6 = vld [vmem:[%s587_s0 + $0xe] sm:$0x1]  }
   0x2   :  { %v318_v1 = vld [vmem:[%s587_s0 + $0x7] sm:$0x1]   ;;  %v322_v4 = vld [vmem:[%s587_s0 + $0x1b] sm:$0x1]   ;;  %v320_v7 = vld [vmem:[%s587_s0 + $0xe] sm:$0x1]  }
   0x3   :  { %v10_v2 = vsel %vm9_vm0, %v318_v1, %v317_v0  ;;  %v37_v5 = vsel %vm36_vm1, %v322_v4, %v321_v3  ;;  %v23_v8 = vsel %vm22_vm2, %v320_v7, %v319_v6  ;;  %v323_v9 = vld [vmem:[%s587_s0 + $0x22] sm:$0x1]   ;;  %vm54_vm4 = vcmask 80896   ;;  %v325_v12 = vld [vmem:[%s587_s0 + $0x29] sm:$0x1]   ;;  %s399_s28 = smov 124  }
   0x4   :  { %11 = vrot.lane.b32.xlu0 %v10_v2, %s397_s14  ;;  %38 = vrot.lane.b32.xlu1 %v37_v5, %s398_s19  ;;  %v324_v10 = vld [vmem:[%s587_s0 + $0x22] sm:$0x1]   ;;  %v326_v13 = vld [vmem:[%s587_s0 + $0x29] sm:$0x1]   ;;  %s400_s29 = smov 120   ;;  %s401_s3 = smov 118  }
   0x5   :  { %v51_v11 = vsel %vm50_vm3, %v324_v10, %v323_v9  ;;  %v65_v14 = vsel %vm54_vm4, %v326_v13, %v325_v12  ;;  %v327_v15 = vld [vmem:[%s587_s0 + $0x6] sm:$0x1]   ;;  %s402_s4 = smov 108   ;;  %v328_v16 = vld [vmem:[%s587_s0 + $0xd] sm:$0x1]   ;;  %s403_s9 = smov 106  }
   0x6   :  { %v329_v17 = vld [vmem:[%s587_s0 + $0x1a] sm:$0x1]   ;;  %s404_s10 = smov 104   ;;  %v330_v18 = vld [vmem:[%s587_s0 + $0x21] sm:$0x1]   ;;  %s405_s15 = smov 102  }
   0x7   :  { %v331_v19 = vld [vmem:[%s587_s0 + $0x28] sm:$0x1]   ;;  %s406_s16 = smov 100   ;;  %v332_v20 = vld [vmem:[%s587_s0 + $0x5] sm:$0x1]   ;;  %vm3_vm5 = vcmask 146432  }
   0x8   :  { %24 = vrot.lane.b32.xlu0 %v23_v8, %s399_s28  ;;  %52 = vrot.lane.b32.xlu1 %v51_v11, %s400_s29  ;;  %v333_v21 = vld [vmem:[%s587_s0 + $0xc] sm:$0x1]   ;;  %v2_v22 = vld [vmem:[%s587_s0] sm:$0x1]   ;;  %s407_s23 = smov 90   ;;  %s408_s24 = smov 88  }
   0x9   :  { %4 = vst.msk [vmem:[#allocation0] sm:$0x1] %vm3_vm5, %v2_v22   ;;  %v334_v23 = vld [vmem:[%s587_s0 + $0x19] sm:$0x1]   ;;  %v335_v24 = vld [vmem:[%s587_s0 + $0x20] sm:$0x1]  }
   0xa   :  { %s409_s29 = smov 86   ;;  %s410_s30 = smov 84   ;;  %v336_v25 = vld [vmem:[%s587_s0 + $0x27] sm:$0x1]   ;;  %v337_v26 = vld [vmem:[%s587_s0 + $0x4] sm:$0x1]  }
   0xb   :  { %s411_s6 = smov 82   ;;  %s412_s7 = smov 72   ;;  %v338_v27 = vld [vmem:[%s587_s0 + $0xb] sm:$0x1]   ;;  %v339_v28 = vld [vmem:[%s587_s0 + $0x18] sm:$0x1]  }
   0xc   :  { %66 = vrot.lane.b32.xlu0 %v65_v14, %s401_s3  ;;  %76 = vrot.lane.b32.xlu1 %v327_v15, %s402_s4  ;;  %s413_s12 = smov 70   ;;  %s414_s13 = smov 68   ;;  %v340_v29 = vld [vmem:[%s587_s0 + $0x1f] sm:$0x1]   ;;  %v341_v30 = vld [vmem:[%s587_s0 + $0x26] sm:$0x1]  }
   0xd   :  { %s415_s18 = smov 66   ;;  %s416_s19 = smov 64   ;;  %v342_v31 = vld [vmem:[%s587_s0 + $0x3] sm:$0x1]   ;;  %v343_v32 = vld [vmem:[%s587_s0 + $0xa] sm:$0x1]  }
   0xe   :  { %s418_s25 = smov 52   ;;  %v344_v33 = vld [vmem:[%s587_s0 + $0x11] sm:$0x1]   ;;  %v345_v34 = vld [vmem:[%s587_s0 + $0x1e] sm:$0x1]   ;;  %s420_s2 = smov 48  }
   0xf   :  { %v346_v35 = vld [vmem:[%s587_s0 + $0x25] sm:$0x1]   ;;  %v347_v36 = vld [vmem:[%s587_s0 + $0x2] sm:$0x1]   ;;  %s422_s8 = smov 36   ;;  %s424_s14 = smov 32  }
  0x10   :  { %82 = vrot.lane.b32.xlu0 %v328_v16, %s403_s9  ;;  %89 = vrot.lane.b32.xlu1 %v329_v17, %s404_s10  ;;  %v348_v37 = vld [vmem:[%s587_s0 + $0x9] sm:$0x1]   ;;  %v349_v38 = vld [vmem:[%s587_s0 + $0x10] sm:$0x1]   ;;  %s426_s20 = smov 28   ;;  %s428_s26 = smov 16  }
  0x11   :  { %v350_v39 = vld [vmem:[%s587_s0 + $0x1d] sm:$0x1]   ;;  %v351_v40 = vld [vmem:[%s587_s0 + $0x24] sm:$0x1]   ;;  %v352_v41 = vld [vmem:[%s587_s0 + $0x1] sm:$0x1]  }
  0x12   :  { %v353_v42 = vld [vmem:[%s587_s0 + $0x8] sm:$0x1]   ;;  %v354_v43 = vld [vmem:[%s587_s0 + $0xf] sm:$0x1]   ;;  %v355_v44 = vld [vmem:[%s587_s0 + $0x1c] sm:$0x1]  }
  0x13   :  { %s430_s3 = smov 12   ;;  %v356_v45 = vld [vmem:[%s587_s0 + $0x23] sm:$0x1]   ;;  %s431_s0 = smov 10   ;;  %vm13_vm6 = vcmask 130048   ;;  %vm16_vm7 = vcmask 1048560  }
  0x14   :  { %96 = vrot.lane.b32.xlu0 %v330_v18, %s405_s15  ;;  %103 = vrot.lane.b32.xlu1 %v331_v19, %s406_s16  ;;  %vm40_vm8 = vcmask 97280   ;;  %vm26_vm9 = vcmask 113664   ;;  %vm29_vm10 = vcmask 1048544   ;;  %vm43_vm11 = vcmask 1048528  }
  0x15   :  { %vm57_vm12 = vcmask 1048512   ;;  %vm71_vm13 = vcmask 1048496   ;;  %vm78_vm14 = vcmask 1032032   ;;  %vm84_vm15 = vcmask 1015632  }
  0x16   :  { %vm91_vm0 = vcmask 999232   ;;  %vm98_vm1 = vcmask 982832   ;;  %vm105_vm2 = vcmask 966432   ;;  %vm125_vm5 = vcmask 851632  }
  0x18   :  { %110 = vrot.lane.b32.xlu0 %v332_v20, %s407_s23  ;;  %116 = vrot.lane.b32.xlu1 %v333_v21, %s408_s24  ;;  %s417_s24 = smov 54  }
  0x1c   :  { %123 = vrot.lane.b32.xlu0 %v334_v23, %s409_s29  ;;  %130 = vrot.lane.b32.xlu1 %v335_v24, %s410_s30  ;;  %s419_s30 = smov 50  }
  0x20   :  { %137 = vrot.lane.b32.xlu0 %v336_v25, %s411_s6  ;;  %144 = vrot.lane.b32.xlu1 %v337_v26, %s412_s7  ;;  %s421_s7 = smov 46  }
  0x24   :  { %150 = vrot.lane.b32.xlu0 %v338_v27, %s413_s12  ;;  %157 = vrot.lane.b32.xlu1 %v339_v28, %s414_s13  ;;  %s423_s13 = smov 34  }
  0x28   :  { %164 = vrot.lane.b32.xlu0 %v340_v29, %s415_s18  ;;  %171 = vrot.lane.b32.xlu1 %v341_v30, %s416_s19  ;;  %s425_s19 = smov 30  }
  0x2c   :  { %178 = vrot.lane.b32.xlu0 %v342_v31, %s417_s24  ;;  %184 = vrot.lane.b32.xlu1 %v343_v32, %s418_s25  ;;  %s427_s25 = smov 18  }
  0x30   :  { %191 = vrot.lane.b32.xlu0 %v344_v33, %s419_s30  ;;  %198 = vrot.lane.b32.xlu1 %v345_v34, %s420_s2  ;;  %s429_s2 = smov 14  }
  0x34   :  { %205 = vrot.lane.b32.xlu0 %v346_v35, %s421_s7  ;;  %212 = vrot.lane.b32.xlu1 %v347_v36, %s422_s8 }
  0x38   :  { %218 = vrot.lane.b32.xlu0 %v348_v37, %s423_s13  ;;  %225 = vrot.lane.b32.xlu1 %v349_v38, %s424_s14 }
  0x3c   :  { %232 = vrot.lane.b32.xlu0 %v350_v39, %s425_s19  ;;  %239 = vrot.lane.b32.xlu1 %v351_v40, %s426_s20 }
  0x40   :  { %246 = vrot.lane.b32.xlu0 %v352_v41, %s427_s25  ;;  %252 = vrot.lane.b32.xlu1 %v353_v42, %s428_s26 }
  0x44   :  { %259 = vrot.lane.b32.xlu0 %v354_v43, %s429_s2  ;;  %266 = vrot.lane.b32.xlu1 %v355_v44, %s430_s3 }
  0x48   :  { %273 = vrot.lane.b32.xlu0 %v356_v45, %s431_s0 }
  0x76   :  { %v12_v46 = vpop.permute.xlu0 %11   ;;  %v39_v47 = vpop.permute.xlu1 %38  }
  0x77   :  { %15 = vst.msk [vmem:[#allocation0 + $0x8] sm:$0x1] %vm13_vm6, %v12_v46   ;;  %vm132_vm6 = vcmask 835232  }
  0x78   :  { %17 = vst.msk [vmem:[#allocation0] sm:$0x1] %vm16_vm7, %v12_v46   ;;  %vm139_vm7 = vcmask 818832  }
  0x79   :  { %42 = vst.msk [vmem:[#allocation0 + $0x18] sm:$0x1] %vm40_vm8, %v39_v47   ;;  %vm146_vm8 = vcmask 736832  }
  0x7a   :  { %v25_v48 = vpop.permute.xlu0 %24   ;;  %v53_v49 = vpop.permute.xlu1 %52  }
  0x7b   :  { %28 = vst.msk [vmem:[#allocation0 + $0x10] sm:$0x1] %vm26_vm9, %v25_v48   ;;  %vm152_vm9 = vcmask 720432  }
  0x7c   :  { %31 = vst.msk [vmem:[#allocation0 + $0x8] sm:$0x1] %vm29_vm10, %v25_v48   ;;  %vm159_vm10 = vcmask 704032  }
  0x7d   :  { %45 = vst.msk [vmem:[#allocation0 + $0x10] sm:$0x1] %vm43_vm11, %v39_v47   ;;  %vm166_vm11 = vcmask 687632  }
  0x7e   :  { %56 = vst.msk [vmem:[#allocation0 + $0x20] sm:$0x1] %vm54_vm4, %v53_v49   ;;  %v67_v50 = vpop.permute.xlu0 %66   ;;  %v77_v51 = vpop.permute.xlu1 %76   ;;  %vm118_vm4 = vcmask 868032  }
  0x7f   :  { %59 = vst.msk [vmem:[#allocation0 + $0x18] sm:$0x1] %vm57_vm12, %v53_v49   ;;  %vm173_vm12 = vcmask 671232  }
  0x80   :  { %70 = vst.msk [vmem:[#allocation0 + $0x28] sm:$0x1] %vm50_vm3, %v67_v50   ;;  %vm112_vm3 = vcmask 884432  }
  0x81   :  { %73 = vst.msk [vmem:[#allocation0 + $0x20] sm:$0x1] %vm71_vm13, %v67_v50   ;;  %vm180_vm13 = vcmask 589232  }
  0x82   :  { %79 = vst.msk [vmem:[#allocation0] sm:$0x1] %vm78_vm14, %v77_v51   ;;  %v83_v52 = vpop.permute.xlu0 %82   ;;  %v90_v53 = vpop.permute.xlu1 %89   ;;  %vm186_vm14 = vcmask 572832  }
  0x83   :  { %86 = vst.msk [vmem:[#allocation0 + $0x8] sm:$0x1] %vm84_vm15, %v83_v52   ;;  %vm193_vm15 = vcmask 556432  }
  0x84   :  { %93 = vst.msk [vmem:[#allocation0 + $0x10] sm:$0x1] %vm91_vm0, %v90_v53   ;;  %vm200_vm0 = vcmask 540032  }
  0x86   :  { %v97_v55 = vpop.permute.xlu0 %96   ;;  %v104_v56 = vpop.permute.xlu1 %103  }
  0x87   :  { %v308_v54 = vld [vmem:[#allocation0 + $0x28] sm:$0x1]  ;;  %100 = vst.msk [vmem:[#allocation0 + $0x18] sm:$0x1] %vm98_vm1, %v97_v55   ;;  %vm207_vm1 = vcmask 523632  }
  0x88   :  { %361 = vst [vmem:[%s588_s1 + $0x5] sm:$0x1] %v308_v54  ;;  %107 = vst.msk [vmem:[#allocation0 + $0x20] sm:$0x1] %vm105_vm2, %v104_v56   ;;  %vm214_vm2 = vcmask 441632  }
  0x8a   :  { %v111_v57 = vpop.permute.xlu0 %110   ;;  %v117_v58 = vpop.permute.xlu1 %116  }
  0x8b   :  { %113 = vst.msk [vmem:[#allocation0] sm:$0x1] %vm112_vm3, %v111_v57   ;;  %vm220_vm3 = vcmask 425232  }
  0x8c   :  { %120 = vst.msk [vmem:[#allocation0 + $0x8] sm:$0x1] %vm118_vm4, %v117_v58   ;;  %vm227_vm4 = vcmask 408832  }
  0x8e   :  { %v124_v59 = vpop.permute.xlu0 %123   ;;  %v131_v60 = vpop.permute.xlu1 %130  }
  0x8f   :  { %127 = vst.msk [vmem:[#allocation0 + $0x10] sm:$0x1] %vm125_vm5, %v124_v59   ;;  %vm234_vm5 = vcmask 392432  }
  0x90   :  { %134 = vst.msk [vmem:[#allocation0 + $0x18] sm:$0x1] %vm132_vm6, %v131_v60   ;;  %vm241_vm6 = vcmask 376032  }
  0x92   :  { %v138_v61 = vpop.permute.xlu0 %137   ;;  %v145_v62 = vpop.permute.xlu1 %144  }
  0x93   :  { %141 = vst.msk [vmem:[#allocation0 + $0x20] sm:$0x1] %vm139_vm7, %v138_v61   ;;  %vm248_vm7 = vcmask 294032  }
  0x94   :  { %147 = vst.msk [vmem:[#allocation0] sm:$0x1] %vm146_vm8, %v145_v62   ;;  %vm254_vm8 = vcmask 277632  }
  0x96   :  { %v151_v63 = vpop.permute.xlu0 %150   ;;  %v158_v0 = vpop.permute.xlu1 %157  }
  0x97   :  { %154 = vst.msk [vmem:[#allocation0 + $0x8] sm:$0x1] %vm152_vm9, %v151_v63   ;;  %vm261_vm9 = vcmask 261232  }
  0x98   :  { %161 = vst.msk [vmem:[#allocation0 + $0x10] sm:$0x1] %vm159_vm10, %v158_v0   ;;  %vm268_vm10 = vcmask 244832  }
  0x9a   :  { %v165_v1 = vpop.permute.xlu0 %164   ;;  %v172_v2 = vpop.permute.xlu1 %171  }
  0x9b   :  { %168 = vst.msk [vmem:[#allocation0 + $0x18] sm:$0x1] %vm166_vm11, %v165_v1   ;;  %vm275_vm11 = vcmask 228432  }
  0x9c   :  { %175 = vst.msk [vmem:[#allocation0 + $0x20] sm:$0x1] %vm173_vm12, %v172_v2  }
  0x9e   :  { %v179_v3 = vpop.permute.xlu0 %178   ;;  %v185_v4 = vpop.permute.xlu1 %184  }
  0x9f   :  { %181 = vst.msk [vmem:[#allocation0] sm:$0x1] %vm180_vm13, %v179_v3  }
  0xa0   :  { %188 = vst.msk [vmem:[#allocation0 + $0x8] sm:$0x1] %vm186_vm14, %v185_v4  }
  0xa2   :  { %v192_v5 = vpop.permute.xlu0 %191   ;;  %v199_v6 = vpop.permute.xlu1 %198  }
  0xa3   :  { %195 = vst.msk [vmem:[#allocation0 + $0x10] sm:$0x1] %vm193_vm15, %v192_v5  }
  0xa4   :  { %202 = vst.msk [vmem:[#allocation0 + $0x18] sm:$0x1] %vm200_vm0, %v199_v6  }
  0xa6   :  { %v206_v7 = vpop.permute.xlu0 %205   ;;  %v213_v8 = vpop.permute.xlu1 %212  }
  0xa7   :  { %209 = vst.msk [vmem:[#allocation0 + $0x20] sm:$0x1] %vm207_vm1, %v206_v7  }
  0xa8   :  { %215 = vst.msk [vmem:[#allocation0] sm:$0x1] %vm214_vm2, %v213_v8  }
  0xaa   :  { %v219_v9 = vpop.permute.xlu0 %218   ;;  %v226_v10 = vpop.permute.xlu1 %225  }
  0xab   :  { %222 = vst.msk [vmem:[#allocation0 + $0x8] sm:$0x1] %vm220_vm3, %v219_v9  }
  0xac   :  { %229 = vst.msk [vmem:[#allocation0 + $0x10] sm:$0x1] %vm227_vm4, %v226_v10  }
  0xae   :  { %v233_v11 = vpop.permute.xlu0 %232   ;;  %v240_v12 = vpop.permute.xlu1 %239  }
  0xaf   :  { %236 = vst.msk [vmem:[#allocation0 + $0x18] sm:$0x1] %vm234_vm5, %v233_v11  }
  0xb0   :  { %243 = vst.msk [vmem:[#allocation0 + $0x20] sm:$0x1] %vm241_vm6, %v240_v12  }
  0xb2   :  { %v247_v13 = vpop.permute.xlu0 %246   ;;  %v253_v14 = vpop.permute.xlu1 %252  }
  0xb3   :  { %249 = vst.msk [vmem:[#allocation0] sm:$0x1] %vm248_vm7, %v247_v13  }
  0xb4   :  { %256 = vst.msk [vmem:[#allocation0 + $0x8] sm:$0x1] %vm254_vm8, %v253_v14  }
  0xb6   :  { %v260_v15 = vpop.permute.xlu0 %259   ;;  %v267_v16 = vpop.permute.xlu1 %266  }
  0xb7   :  { %263 = vst.msk [vmem:[#allocation0 + $0x10] sm:$0x1] %vm261_vm9, %v260_v15  }
  0xb8   :  { %270 = vst.msk [vmem:[#allocation0 + $0x18] sm:$0x1] %vm268_vm10, %v267_v16  }
  0xba   :  { %v281_v17 = vld [vmem:[#allocation0] sm:$0x1]  ;;  %v274_v18 = vpop.permute.xlu0 %273  }
  0xbb   :  { %283 = vst [vmem:[%s588_s1] sm:$0x1] %v281_v17  ;;  %v285_v19 = vld [vmem:[#allocation0 + $0x8] sm:$0x1]  ;;  %277 = vst.msk [vmem:[#allocation0 + $0x20] sm:$0x1] %vm275_vm11, %v274_v18  }
  0xbc   :  { %357 = vst [vmem:[%s588_s1 + $0x1] sm:$0x1] %v285_v19 }
  0xbe   :  { %v290_v20 = vld [vmem:[#allocation0 + $0x10] sm:$0x1] }
  0xbf   :  { %358 = vst [vmem:[%s588_s1 + $0x2] sm:$0x1] %v290_v20  ;;  %v296_v21 = vld [vmem:[#allocation0 + $0x18] sm:$0x1] }
  0xc0   :  { %359 = vst [vmem:[%s588_s1 + $0x3] sm:$0x1] %v296_v21 }
  0xc2   :  { %v302_v22 = vld [vmem:[#allocation0 + $0x20] sm:$0x1] }
  0xc3   :  { %360 = vst [vmem:[%s588_s1 + $0x4] sm:$0x1] %v302_v22 }

// kernel: double_conv.1
= control target key start
LH: loop header
LB: loop body
LE: loop exit
PB: predicated region body
PF: predicated region fallthrough
CT: control target
= control target key end

     0   :  { %s1455_s9 = smov 110   ;;  %s1456_s10 = smov 127   ;;  %v1462_v15 = vmov 0.0   ;;  %vm105_vm0 = vcmask 900096   ;;  %vm57_vm1 = vcmask 1039360   ;;  %vm81_vm2 = vcmask 1031168   ;;  %s2042_s0 = inlined_call_operand.vmem [shape: f32[4,768], index: 0, kind: input, shape index: {}]   ;;  %s2043_s2 = inlined_call_operand.vmem [shape: f32[8,36], index: 2, kind: input, shape index: {}]   ;;  %s2044_s1 = inlined_call_operand.vmem [shape: f32[1,648], index: 1, kind: input, shape index: {}]   ;;  %s2045_s4 = inlined_call_operand.vmem [shape: f32[8,1], index: 4, kind: input, shape index: {}]   ;;  %s2046_s3 = inlined_call_operand.vmem [shape: f32[8,1], index: 3, kind: input, shape index: {}]   ;;  %s2047_s5 = inlined_call_operand.vmem [shape: f32[8,72], index: 5, kind: input, shape index: {}]   ;;  %s2048_s7 = inlined_call_operand.vmem [shape: f32[8,1], index: 7, kind: input, shape index: {}]   ;;  %s2049_s6 = inlined_call_operand.vmem [shape: f32[8,1], index: 6, kind: input, shape index: {}]   ;;  %s2050_s8 = inlined_call_operand.vmem [shape: f32[8,648], index: 8, kind: output, shape index: {}]  }
   0x1   :  { %v1514_v0 = vld [vmem:[%s2042_s0] sm:$0xff]  ;;  %v1519_v1 = vld [vmem:[%s2042_s0 + $0x8] sm:$0xff]  ;;  %s1457_s11 = smov 126   ;;  %s1458_s12 = smov 108   ;;  %v1552_v10 = vld [vmem:[%s2042_s0 + $0x10] sm:$0xff]  ;;  %337 = vmatprep.mubr.f32.mxu0 %v1462_v15  ;;  %408 = vmatprep.mubr.f32.mxu1 %v1462_v15  ;;  %vm231_vm3 = vcmask 1043456  }
   0x2   :  { %v43_v2 = vcombine.low %v1519_v1, %v1519_v1  ;;  %v42_v3 = vcombine.low %v1514_v0, %v1514_v0  ;;  %v1527_v4 = vcombine.high %v1514_v0, %v1514_v0  ;;  %v1537_v8 = vcombine.high %v1519_v1, %v1519_v1  ;;  %s1459_s13 = smov 109   ;;  %s1460_s14 = smov 91  }
   0x3   :  { %s1461_s15 = smov 92   ;;  %v1556_v11 = vcombine.high %v1552_v10, %v1552_v10  ;;  %v44_v12 = vcombine.low %v1552_v10, %v1552_v10  ;;  %s1463_s0 = smov 90   ;;  %vm153_vm4 = vcmask 883712   ;;  %vm129_vm5 = vcmask 891904  }
   0x4   :  { %v1258_v5 = vpack.i.bf16 %v43_v2, %v1514_v0  ;;  %v1263_v6 = vpack.i.bf16 %v1519_v1, %v42_v3  ;;  %v1253_v7 = vpack.i.bf16 %v1519_v1, %v1527_v4  ;;  %v1268_v9 = vpack.i.bf16 %v1537_v8, %v1514_v0 }
   0x5   :  { %v1323_v13 = vpack.i.bf16 %v1556_v11, %v1552_v10  ;;  %v1318_v14 = vpack.i.bf16 %v1552_v10, %v44_v12  ;;  %vm201_vm6 = vcmask 744448   ;;  %vm177_vm7 = vcmask 752640  }
   0x6   :  { %1259 = vrot.lane.b32.xlu1 %v1258_v5, %s1455_s9  ;;  %1249 = vrot.lane.b32.xlu0 %v1258_v5, %s1456_s10  ;;  %vm225_vm8 = vcmask 736256   ;;  %vm257_vm9 = vcmask 293888   ;;  %vm527_vm10 = vcmask 64512   ;;  %vm600_vm11 = vcmask 154624  }
   0x7   :  { %601 = vst.msk [vmem:[#allocation2] sm:$0xff] %vm600_vm11, %v1462_v15  ;;  %vm637_vm12 = vcmask 1047704   ;;  %vm643_vm13 = vcmask 220160   ;;  %vm645_vm14 = vcmask 1047768   ;;  %vm844_vm15 = vcmask 588800  }
   0xa   :  { %1264 = vrot.lane.b32.xlu1 %v1263_v6, %s1456_s10  ;;  %1254 = vrot.lane.b32.xlu0 %v1253_v7, %s1457_s11 }
   0xe   :  { %1274 = vrot.lane.b32.xlu1 %v1263_v6, %s1455_s9  ;;  %1269 = vrot.lane.b32.xlu0 %v1268_v9, %s1457_s11 }
  0x12   :  { %1284 = vrot.lane.b32.xlu1 %v1258_v5, %s1458_s12  ;;  %1279 = vrot.lane.b32.xlu0 %v1253_v7, %s1459_s13 }
  0x16   :  { %1294 = vrot.lane.b32.xlu1 %v1258_v5, %s1460_s14  ;;  %1289 = vrot.lane.b32.xlu0 %v1253_v7, %s1461_s15 }
  0x1a   :  { %1304 = vrot.lane.b32.xlu1 %v1263_v6, %s1458_s12  ;;  %1299 = vrot.lane.b32.xlu0 %v1268_v9, %s1459_s13 }
  0x1e   :  { %1314 = vrot.lane.b32.xlu1 %v1263_v6, %s1460_s14  ;;  %1309 = vrot.lane.b32.xlu0 %v1268_v9, %s1461_s15 }
  0x22   :  { %1324 = vrot.lane.b32.xlu1 %v1323_v13, %s1457_s11  ;;  %1319 = vrot.lane.b32.xlu0 %v1318_v14, %s1456_s10 }
  0x26   :  { %1334 = vrot.lane.b32.xlu1 %v1323_v13, %s1459_s13  ;;  %1329 = vrot.lane.b32.xlu0 %v1318_v14, %s1455_s9 }
  0x2a   :  { %1344 = vrot.lane.b32.xlu1 %v1323_v13, %s1461_s15  ;;  %1339 = vrot.lane.b32.xlu0 %v1318_v14, %s1458_s12 }
  0x2e   :  { %215 = vrot.lane.b32.xlu1 %v1527_v4, %s1463_s0  ;;  %197 = vrot.lane.b32.xlu0 %v44_v12, %s1460_s14 }
  0x32   :  { %213 = vrot.lane.b32.xlu1 %v1514_v0, %s1463_s0  ;;  %217 = vrot.lane.b32.xlu0 %v1519_v1, %s1463_s0 }
  0x36   :  { %219 = vrot.lane.b32.xlu1 %v1537_v8, %s1463_s0  ;;  %199 = vrot.lane.b32.xlu0 %v1552_v10, %s1460_s14 }
  0x3a   :  { %223 = vrot.lane.b32.xlu1 %v1556_v11, %s1463_s0  ;;  %221 = vrot.lane.b32.xlu0 %v1552_v10, %s1463_s0 }
  0x78   :  { %v1590_v16 = vpop.permute.xlu1 %1259  ;;  %v1592_v17 = vpop.permute.xlu0 %1249 }
  0x79   :  { %v1262_v18 = vunpack.i.h.bf16 %v1590_v16  ;;  %v1261_v19 = vunpack.i.l.bf16 %v1590_v16  ;;  %v1252_v20 = vunpack.i.h.bf16 %v1592_v17  ;;  %v1251_v21 = vunpack.i.l.bf16 %v1592_v17 }
  0x7b   :  { %v107_v26 = vsel %vm105_vm0, %v1261_v19, %v1262_v18  ;;  %v59_v28 = vsel %vm57_vm1, %v1251_v21, %v1252_v20 }
  0x7c   :  { %v1598_v22 = vpop.permute.xlu1 %1264  ;;  %v1600_v23 = vpop.permute.xlu0 %1254  ;;  %v233_v35 = vsel %vm231_vm3, %v1527_v4, %v59_v28 }
  0x7d   :  { %v1257_v24 = vunpack.i.h.bf16 %v1600_v23  ;;  %v1256_v25 = vunpack.i.l.bf16 %v1600_v23  ;;  %v1266_v27 = vunpack.i.l.bf16 %v1598_v22 }
  0x7f   :  { %v83_v29 = vsel %vm81_vm2, %v1256_v25, %v1257_v24  ;;  %v58_v37 = vsel %vm57_vm1, %v1266_v27, %v1251_v21 }
  0x80   :  { %v1614_v30 = vpop.permute.xlu1 %1274  ;;  %v1616_v31 = vpop.permute.xlu0 %1269  ;;  %v239_v32 = vsel %vm231_vm3, %v83_v29, %v107_v26  ;;  %v232_v44 = vsel %vm231_vm3, %v1514_v0, %v58_v37  ;;  %v1267_v29 = vunpack.i.h.bf16 %v1598_v22 }
  0x81   :  { %v1276_v33 = vunpack.i.l.bf16 %v1614_v30  ;;  %v1271_v34 = vunpack.i.l.bf16 %v1616_v31  ;;  %v1165_v36 = vpack.c.bf16 %v239_v32, %v233_v35  ;;  %v1277_v12 = vunpack.i.h.bf16 %v1614_v30 }
  0x82   :  { %v1272_v13 = vunpack.i.h.bf16 %v1616_v31 }
  0x83   :  { %v82_v38 = vsel %vm81_vm2, %v1271_v34, %v1256_v25  ;;  %v106_v39 = vsel %vm105_vm0, %v1276_v33, %v1261_v19  ;;  %1166 = vmatprep.subr.bf16.mxu0 %v1165_v36  ;;  %v108_v34 = vsel %vm105_vm0, %v1262_v18, %v1277_v12 }
  0x84   :  { %v1626_v40 = vpop.permute.xlu1 %1284  ;;  %v1628_v41 = vpop.permute.xlu0 %1279  ;;  %v238_v42 = vsel %vm231_vm3, %v82_v38, %v106_v39  ;;  %v84_v31 = vsel %vm81_vm2, %v1257_v24, %v1272_v13 }
  0x85   :  { %v1287_v43 = vunpack.i.h.bf16 %v1626_v40  ;;  %v1286_v45 = vunpack.i.l.bf16 %v1626_v40  ;;  %v1282_v46 = vunpack.i.h.bf16 %v1628_v41  ;;  %v1281_v47 = vunpack.i.l.bf16 %v1628_v41 }
  0x86   :  { %v1167_v48 = vpack.c.bf16 %v238_v42, %v232_v44  ;;  %v60_v42 = vsel %vm57_vm1, %v1252_v20, %v1267_v29  ;;  %v240_v23 = vsel %vm231_vm3, %v84_v31, %v108_v34 }
  0x87   :  { %v155_v55 = vsel %vm153_vm4, %v1286_v45, %v1287_v43  ;;  %v131_v56 = vsel %vm129_vm5, %v1281_v47, %v1282_v46 }
  0x88   :  { %1168 = vmatpush1.bf16.msra.mxu0 %v1167_v48  ;;  %v1295_v49 = vpop.permute.xlu1 %1294  ;;  %v1290_v50 = vpop.permute.xlu0 %1289  ;;  %v245_v62 = vsel %vm231_vm3, %v131_v56, %v155_v55 }
  0x89   :  { %v1297_v51 = vunpack.i.h.bf16 %v1295_v49  ;;  %v1296_v52 = vunpack.i.l.bf16 %v1295_v49  ;;  %v1292_v53 = vunpack.i.h.bf16 %v1290_v50  ;;  %v1291_v54 = vunpack.i.l.bf16 %v1290_v50 }
  0x8b   :  { %v203_v57 = vsel %vm201_vm6, %v1296_v52, %v1297_v51  ;;  %v179_v58 = vsel %vm177_vm7, %v1291_v54, %v1292_v53 }
  0x8c   :  { %v1305_v59 = vpop.permute.xlu1 %1304  ;;  %v1645_v60 = vpop.permute.xlu0 %1299  ;;  %v251_v61 = vsel %vm231_vm3, %v179_v58, %v203_v57 }
  0x8d   :  { %v1306_v63 = vunpack.i.l.bf16 %v1305_v59  ;;  %v1301_v0 = vunpack.i.l.bf16 %v1645_v60  ;;  %v1169_v2 = vpack.c.bf16 %v251_v61, %v245_v62  ;;  %v1307_v22 = vunpack.i.h.bf16 %v1305_v59 }
  0x8e   :  { %v1302_v24 = vunpack.i.h.bf16 %v1645_v60 }
  0x8f   :  { %1170 = vmatprep.subr.bf16.mxu0 %v1169_v2  ;;  %v154_v7 = vsel %vm153_vm4, %v1306_v63, %v1286_v45  ;;  %v130_v9 = vsel %vm129_vm5, %v1301_v0, %v1281_v47  ;;  %v156_v57 = vsel %vm153_vm4, %v1287_v43, %v1307_v22 }
  0x90   :  { %v1315_v3 = vpop.permute.xlu1 %1314  ;;  %v1310_v4 = vpop.permute.xlu0 %1309  ;;  %v244_v28 = vsel %vm231_vm3, %v130_v9, %v154_v7 }
  0x91   :  { %v1316_v5 = vunpack.i.l.bf16 %v1315_v3  ;;  %v1311_v6 = vunpack.i.l.bf16 %v1310_v4  ;;  %v1317_v33 = vunpack.i.h.bf16 %v1315_v3  ;;  %v1312_v35 = vunpack.i.h.bf16 %v1310_v4 }
  0x93   :  { %v202_v14 = vsel %vm201_vm6, %v1316_v5, %v1296_v52  ;;  %v178_v19 = vsel %vm177_vm7, %v1311_v6, %v1291_v54  ;;  %v204_v16 = vsel %vm201_vm6, %v1297_v51, %v1317_v33  ;;  %v180_v45 = vsel %vm177_vm7, %v1292_v53, %v1312_v35 }
  0x94   :  { %v1325_v21 = vpop.permute.xlu1 %1324  ;;  %v1656_v25 = vpop.permute.xlu0 %1319  ;;  %v250_v26 = vsel %vm231_vm3, %v178_v19, %v202_v14  ;;  %v234_v53 = vsel %vm231_vm3, %v1519_v1, %v60_v42  ;;  %v252_v63 = vsel %vm231_vm3, %v180_v45, %v204_v16  ;;  %v487_v45 = vlaneseq }
  0x95   :  { %v1321_v27 = vunpack.i.l.bf16 %v1656_v25  ;;  %v1171_v32 = vpack.c.bf16 %v250_v26, %v244_v28  ;;  %v1326_v30 = vunpack.i.l.bf16 %v1325_v21  ;;  %v1327_v47 = vunpack.i.h.bf16 %v1325_v21 }
  0x96   :  { %v1322_v55 = vunpack.i.h.bf16 %v1656_v25  ;;  %v1175_v59 = vpack.c.bf16 %v240_v23, %v234_v53 }
  0x97   :  { %1172 = vmatpush1.bf16.msra.mxu0 %v1171_v32  ;;  %v61_v39 = vsel %vm57_vm1, %v1267_v29, %v1321_v27  ;;  %v85_v18 = vsel %vm81_vm2, %v1272_v13, %v1326_v30  ;;  %v86_v60 = vsel %vm81_vm2, %v1326_v30, %v1327_v47 }
  0x98   :  { %v1668_v36 = vpop.permute.xlu1 %1334  ;;  %v1330_v37 = vpop.permute.xlu0 %1329  ;;  %v235_v17 = vsel %vm231_vm3, %v1537_v8, %v61_v39  ;;  %v132_v8 = vsel %vm129_vm5, %v1282_v46, %v1302_v24  ;;  %v62_v46 = vsel %vm57_vm1, %v1321_v27, %v1322_v55  ;;  %v237_v26 = vsel %vm231_vm3, %v1556_v11, %v1322_v55  ;;  %v256_v27 = vld [vmem:[%s2043_s2] sm:$0xff] }
  0x99   :  { %v1331_v38 = vunpack.i.l.bf16 %v1330_v37  ;;  %v1336_v50 = vunpack.i.l.bf16 %v1668_v36  ;;  %v1332_v52 = vunpack.i.h.bf16 %v1330_v37  ;;  %v246_v3 = vsel %vm231_vm3, %v132_v8, %v156_v57 }
  0x9a   :  { %v1337_v4 = vunpack.i.h.bf16 %v1668_v36  ;;  %v1179_v14 = vpack.c.bf16 %v252_v63, %v246_v3  ;;  %v236_v29 = vsel %vm231_vm3, %v1552_v10, %v62_v46 }
  0x9b   :  { %v109_v44 = vsel %vm105_vm0, %v1277_v12, %v1331_v38  ;;  %v133_v1 = vsel %vm129_vm5, %v1302_v24, %v1336_v50  ;;  %v110_v40 = vsel %vm105_vm0, %v1331_v38, %v1332_v52  ;;  %v243_v7 = vsel %vm231_vm3, %v1327_v47, %v1332_v52 }
  0x9c   :  { %v1680_v48 = vpop.permute.xlu1 %1344  ;;  %v1340_v49 = vpop.permute.xlu0 %1339  ;;  %v241_v20 = vsel %vm231_vm3, %v85_v18, %v109_v44  ;;  %v242_v19 = vsel %vm231_vm3, %v86_v60, %v110_v40  ;;  %v1181_v28 = vpack.c.bf16 %v243_v7, %v237_v26  ;;  %v134_v32 = vsel %vm129_vm5, %v1336_v50, %v1337_v4 }
  0x9d   :  { %v1346_v51 = vunpack.i.l.bf16 %v1680_v48  ;;  %v1341_v54 = vunpack.i.l.bf16 %v1340_v49  ;;  %v1173_v56 = vpack.c.bf16 %v241_v20, %v235_v17  ;;  %v1342_v5 = vunpack.i.h.bf16 %v1340_v49  ;;  %v29_v49 = vld [vmem:[%s2044_s1] sm:$0x3f] }
  0x9e   :  { %v1347_v9 = vunpack.i.h.bf16 %v1680_v48  ;;  %v1183_v30 = vpack.c.bf16 %v242_v19, %v236_v29  ;;  %v1464_v44 = vmov 0   ;;  %v488_v47 = vshrl.u32 %v487_v45, 7 }
  0x9f   :  { %v157_v58 = vsel %vm153_vm4, %v1307_v22, %v1341_v54  ;;  %1174 = vmatprep.subr.bf16.mxu1 %v1173_v56  ;;  %v181_v43 = vsel %vm177_vm7, %v1312_v35, %v1346_v51  ;;  %v249_v36 = vsel %vm231_vm3, %v1337_v4, %v1342_v5  ;;  %1348 = vset.pattern.permute.xlu0 %v1464_v44 }
  0xa0   :  { %v216_v61 = vpop.permute.xlu1 %215  ;;  %v198_v62 = vpop.permute.xlu0 %197  ;;  %1176 = vmatpush1.bf16.msra.mxu1 %v1175_v59  ;;  %v247_v2 = vsel %vm231_vm3, %v133_v1, %v157_v58  ;;  %v182_v31 = vsel %vm177_vm7, %v1346_v51, %v1347_v9  ;;  %1349 = vset.pattern.permute.xlu1 %v1464_v44  ;;  %v489_v48 = vsub.s32 0, %v488_v47  ;;  %v493_v17 = vsub.s32 1, %v488_v47 }
  0xa1   :  { %v205_v41 = vsel %vm201_vm6, %v1317_v33, %v198_v62  ;;  %v158_v33 = vsel %vm153_vm4, %v1341_v54, %v1342_v5  ;;  %v497_v56 = vsub.s32 2, %v488_v47  ;;  %v501_v8 = vsub.s32 3, %v488_v47 }
  0xa2   :  { %v253_v0 = vsel %vm231_vm3, %v181_v43, %v205_v41  ;;  %v248_v37 = vsel %vm231_vm3, %v134_v32, %v158_v33  ;;  %v1746_v20 = vrot.slane %v29_v49, %v489_v48  ;;  %v1748_v50 = vrot.slane %v29_v49, %v493_v17 }
  0xa3   :  { %v1177_v6 = vpack.c.bf16 %v253_v0, %v247_v2  ;;  %v505_v59 = vsub.s32 4, %v488_v47  ;;  %v1764_v63 = vrot.slane %v29_v49, %v497_v56  ;;  %v1766_v40 = vrot.slane %v29_v49, %v501_v8 }
  0xa4   :  { %v214_v12 = vpop.permute.xlu1 %213  ;;  %v218_v13 = vpop.permute.xlu0 %217 }
  0xa5   :  { %v226_v21 = vsel %vm225_vm8, %v214_v12, %v216_v61  ;;  %v227_v25 = vsel %vm225_vm8, %v216_v61, %v218_v13  ;;  %1178 = vmatprep.subr.bf16.mxu1 %v1177_v6  ;;  %v1768_v43 = vrot.slane %v29_v49, %v505_v59 }
  0xa6   :  { %1153 = vmatprep.subr.msk.mxu0 %vm231_vm3, %v227_v25  ;;  %1180 = vmatpush1.bf16.msra.mxu1 %v1179_v14 }
  0xa7   :  { %1154 = vmatpush1.msk.msra.mxu0 %vm231_vm3, %v226_v21 }
  0xa8   :  { %v220_v11 = vpop.permute.xlu1 %219  ;;  %v200_v34 = vpop.permute.xlu0 %199  ;;  %1182 = vmatprep.subr.bf16.mxu0 %v1181_v28  ;;  %1155 = vmatmul.mubr.msk.f32.vlgmr.msra.gmra.mrb[0].mxu0 %vm257_vm9, %v256_v27 }
  0xa9   :  { %v206_v35 = vsel %vm201_vm6, %v198_v62, %v200_v34  ;;  %v255_v10 = vsel %vm231_vm3, %v1347_v9, %v200_v34  ;;  %1184 = vmatpush1.bf16.msra.mxu0 %v1183_v30  ;;  %479 = vmatprep.mubr.f32.mxu0 %v1462_v15  ;;  %v228_v16 = vsel %vm225_vm8, %v218_v13, %v220_v11  ;;  %v509_v62 = vsub.s32 5, %v488_v47 }
  0xaa   :  { %v254_v38 = vsel %vm231_vm3, %v182_v31, %v206_v35  ;;  %v1185_v39 = vpack.c.bf16 %v255_v10, %v249_v36  ;;  %v582_v36 = vld [vmem:[%s2045_s4] sm:$0xff] }
  0xab   :  { %v1187_v22 = vpack.c.bf16 %v254_v38, %v248_v37  ;;  %v1770_v46 = vrot.slane %v29_v49, %v509_v62  ;;  %v570_v10 = vld [vmem:[%s2046_s3] sm:$0xff]  ;;  %s1465_s3 = smov 19  }
  0xac   :  { %v222_v42 = vpop.permute.xlu0 %221  ;;  %1186 = vmatprep.subr.bf16.mxu0 %v1185_v39  ;;  %v224_v23 = vpop.permute.xlu1 %223 }
  0xad   :  { %v229_v24 = vsel %vm225_vm8, %v220_v11, %v222_v42  ;;  %1188 = vmatpush1.bf16.msra.mxu0 %v1187_v22  ;;  %v230_v18 = vsel %vm225_vm8, %v222_v42, %v224_v23 }
  0xae   :  { %1156 = vmatprep.subr.msk.mxu1 %vm231_vm3, %v229_v24  ;;  %1159 = vmatprep.subr.msk.mxu0 %vm231_vm3, %v224_v23 }
  0xaf   :  { %1157 = vmatpush1.msk.msra.mxu1 %vm231_vm3, %v228_v16 }
  0xb0   :  { %1158 = vmatmul.mubr.msk.f32.vlgmr.msra.gmra.mrb[0].mxu1 %vm257_vm9, %v256_v27 }
  0xb1   :  { %1160 = vmatpush1.msk.msra.mxu0 %vm231_vm3, %v230_v18  ;;  %912 = vmatprep.mubr.f32.mxu1 %v1462_v15 }
  0xb2   :  { %1161 = vmatmul.mubr.msk.f32.vlgmr.msra.gmra.mrb[2].mxu0 %vm257_vm9, %v256_v27 }
  0xb3   :  { %983 = vmatprep.mubr.f32.mxu0 %v1462_v15 }
 0x17b   :  { %v1750_v52 = vpop.f32.mrb[0].mxu0 }
 0x17c   :  { %v517_v51 = vmul.f32 %v1746_v20, %v1750_v52  ;;  %v532_v54 = vmul.f32 %v1750_v52, %v1750_v52  ;;  %v1756_v55 = vpop.f32.mrb[1].mxu0 }
 0x17d   :  { %v518_v53 = vmul.f32 %v1748_v50, %v1756_v55  ;;  %v533_v57 = vmul.f32 %v1756_v55, %v1756_v55 }
 0x17e   :  { %v538_v58 = vmul.f32 %v532_v54, %v1746_v20 }
 0x17f   :  { %v523_v60 = vadd.f32 %v518_v53, %v517_v51  ;;  %v539_v61 = vmul.f32 %v533_v57, %v1748_v50 }
 0x181   :  { %v544_v1 = vadd.f32 %v539_v61, %v538_v58 }
 0x183   :  { %v410_v41 = vpop.f32.mrb[0].mxu1 }
 0x184   :  { %v519_v0 = vmul.f32 %v1764_v63, %v410_v41  ;;  %v534_v2 = vmul.f32 %v410_v41, %v410_v41  ;;  %v412_v3 = vpop.f32.mrb[1].mxu1 }
 0x185   :  { %v520_v4 = vmul.f32 %v1766_v40, %v412_v3  ;;  %v535_v5 = vmul.f32 %v412_v3, %v412_v3  ;;  %v481_v6 = vpop.f32.mrb[2].mxu0 }
 0x186   :  { %v524_v7 = vadd.f32 %v523_v60, %v519_v0  ;;  %v540_v9 = vmul.f32 %v534_v2, %v1764_v63  ;;  %v521_v12 = vmul.f32 %v1768_v43, %v481_v6  ;;  %v536_v13 = vmul.f32 %v481_v6, %v481_v6  ;;  %v483_v14 = vpop.f32.mrb[3].mxu0 }
 0x187   :  { %v541_v19 = vmul.f32 %v535_v5, %v1766_v40  ;;  %v522_v21 = vmul.f32 %v1770_v46, %v483_v14  ;;  %v537_v25 = vmul.f32 %v483_v14, %v483_v14 }
 0x188   :  { %v525_v26 = vadd.f32 %v524_v7, %v520_v4  ;;  %v542_v27 = vmul.f32 %v536_v13, %v1768_v43  ;;  %v545_v28 = vadd.f32 %v544_v1, %v540_v9 }
 0x189   :  { %v528_v29 = vsel %vm527_vm10, %v522_v21, 0.0  ;;  %v543_v32 = vmul.f32 %v537_v25, %v1770_v46 }
 0x18a   :  { %v526_v33 = vadd.f32 %v525_v26, %v521_v12  ;;  %v546_v30 = vadd.f32 %v545_v28, %v541_v19 }
 0x18b   :  { %v548_v11 = vsel %vm527_vm10, %v543_v32, 0.0 }
 0x18c   :  { %v529_v31 = vadd.f32 %v528_v29, %v526_v33  ;;  %v547_v34 = vadd.f32 %v546_v30, %v542_v27 }
 0x18e   :  { %530 = vadd.xlane.f32.xlu0 %v529_v31  ;;  %v549_v35 = vadd.f32 %v548_v11, %v547_v34 }
 0x190   :  { %550 = vadd.xlane.f32.xlu1 %v549_v35 }
 0x1a1   :  { %585 = vperm.xlu1 %1349, %v582_v36  }
 0x1a4   :  { %573 = vperm.xlu0 %1348, %v570_v10  }
 0x21b   :  { %v531_v37 = vpop.xlane.xlu0 %530 }
 0x21c   :  { %v552_v38 = vmul.f32 0.001953125, %v531_v37 }
 0x21d   :  { %v551_v39 = vpop.xlane.xlu1 %550 }
 0x21e   :  { %v553_v22 = vmul.f32 0.001953125, %v551_v39  ;;  %v554_v42 = vmul.f32 %v552_v38, %v552_v38  ;;  %v556_v16 = vsub.f32 %v1750_v52, %v552_v38  ;;  %v557_v18 = vsub.f32 %v1756_v55, %v552_v38 }
 0x21f   :  { %v558_v44 = vsub.f32 %v410_v41, %v552_v38  ;;  %v559_v53 = vsub.f32 %v412_v3, %v552_v38  ;;  %v560_v60 = vsub.f32 %v481_v6, %v552_v38  ;;  %v561_v0 = vsub.f32 %v483_v14, %v552_v38 }
 0x220   :  { %v555_v23 = vsub.f32 %v553_v22, %v554_v42 }
 0x221   :  { %v586_v51 = vpop.permute.xlu1 %585 }
 0x222   :  { %v562_v24 = vadd.f32 1e-05, %v555_v23 }
 0x223   :  { %v574_v47 = vpop.permute.xlu0 %573 }
 0x224   :  { %1451 = vrsqrt.f32 %v562_v24 }
 0x22e   :  { %v1452_v45 = vpop.eup %1451 }
 0x22f   :  { %v564_v48 = vmul.f32 %v1452_v45, %v556_v16  ;;  %v565_v49 = vmul.f32 %v1452_v45, %v557_v18  ;;  %v566_v17 = vmul.f32 %v1452_v45, %v558_v44  ;;  %v567_v59 = vmul.f32 %v1452_v45, %v559_v53 }
 0x230   :  { %v568_v62 = vmul.f32 %v1452_v45, %v560_v60  ;;  %v569_v2 = vmul.f32 %v1452_v45, %v561_v0 }
 0x231   :  { %v576_v54 = vmul.f32 %v574_v47, %v564_v48  ;;  %v577_v56 = vmul.f32 %v574_v47, %v565_v49  ;;  %v578_v58 = vmul.f32 %v574_v47, %v566_v17  ;;  %v579_v41 = vmul.f32 %v574_v47, %v567_v59 }
 0x232   :  { %v580_v7 = vmul.f32 %v574_v47, %v568_v62  ;;  %v581_v13 = vmul.f32 %v574_v47, %v569_v2 }
 0x233   :  { %v588_v57 = vadd.f32 %v586_v51, %v576_v54  ;;  %v589_v8 = vadd.f32 %v586_v51, %v577_v56  ;;  %v590_v1 = vadd.f32 %v586_v51, %v578_v58  ;;  %v591_v3 = vadd.f32 %v586_v51, %v579_v41 }
 0x234   :  { %v592_v12 = vadd.f32 %v586_v51, %v580_v7  ;;  %v593_v25 = vadd.f32 %v586_v51, %v581_v13 }
 0x235   :  { %v594_v61 = vmax.f32 %v588_v57, 0.0  ;;  %v595_v55 = vmax.f32 %v589_v8, 0.0  ;;  %v596_v5 = vmax.f32 %v590_v1, 0.0  ;;  %v597_v6 = vmax.f32 %v591_v3, 0.0 }
 0x236   :  { %v598_v21 = vmax.f32 %v592_v12, 0.0  ;;  %v599_v26 = vmax.f32 %v593_v25, 0.0 }
 0x237   :  { %v602_v52 = vmul.f32 %v594_v61, %v1746_v20  ;;  %v603_v4 = vmul.f32 %v595_v55, %v1748_v50  ;;  %v604_v9 = vmul.f32 %v596_v5, %v1764_v63  ;;  %v605_v19 = vmul.f32 %v597_v6, %v1766_v40 }
 0x238   :  { %v606_v14 = vmul.f32 %v598_v21, %v1768_v43  ;;  %v607_v27 = vmul.f32 %v599_v26, %v1770_v46 }
 0x239   :  { %614 = vrot.lane.b32.xlu1 %v602_v52, %s1465_s3 }
 0x23d   :  { %616 = vrot.lane.b32.xlu1 %v603_v4, %s1465_s3 }
 0x241   :  { %618 = vrot.lane.b32.xlu1 %v604_v9, %s1465_s3 }
 0x245   :  { %620 = vrot.lane.b32.xlu1 %v605_v19, %s1465_s3 }
 0x249   :  { %622 = vrot.lane.b32.xlu1 %v606_v14, %s1465_s3 }
 0x24d   :  { %624 = vrot.lane.b32.xlu1 %v607_v27, %s1465_s3 }
 0x2ab   :  { %v615_v28 = vpop.permute.xlu1 %614 }
 0x2ac   :  { %638 = vst.msk [vmem:[#allocation2] sm:$0xff] %vm637_vm12, %v615_v28 }
 0x2af   :  { %v617_v29 = vpop.permute.xlu1 %616 }
 0x2b0   :  { %v626_v32 = vsel %vm600_vm11, %v615_v28, %v617_v29 }
 0x2b3   :  { %v619_v33 = vpop.permute.xlu1 %618  ;;  %v1799_v30 = vld [vmem:[#allocation2] sm:$0xff] }
 0x2b4   :  { %v1802_v11 = vsel %vm600_vm11, %v617_v29, %v619_v33  ;;  %797 = vrot.lane.b32.xlu1 %v1799_v30, %s1460_s14 }
 0x2b5   :  { %v1350_v31 = vpack.i.bf16 %v1802_v11, %v626_v32 }
 0x2b7   :  { %v621_v34 = vpop.permute.xlu1 %620  ;;  %1351 = vrot.lane.b32.xlu0 %v1350_v31, %s1456_s10 }
 0x2b8   :  { %v1809_v35 = vsel %vm600_vm11, %v619_v33, %v621_v34  ;;  %820 = vrot.lane.b32.xlu1 %v1799_v30, %s1463_s0 }
 0x2b9   :  { %v1355_v36 = vpack.i.bf16 %v1809_v35, %v1799_v30 }
 0x2bb   :  { %v623_v10 = vpop.permute.xlu1 %622  ;;  %1361 = vrot.lane.b32.xlu0 %v1350_v31, %s1457_s11 }
 0x2bc   :  { %v1817_v37 = vsel %vm600_vm11, %v621_v34, %v623_v10  ;;  %1356 = vrot.lane.b32.xlu1 %v1355_v36, %s1456_s10 }
 0x2bd   :  { %v1425_v23 = vpack.i.bf16 %v1817_v37, %v1809_v35 }
 0x2bf   :  { %v625_v38 = vpop.permute.xlu1 %624  ;;  %1371 = vrot.lane.b32.xlu0 %v1355_v36, %s1457_s11 }
 0x2c0   :  { %v630_v39 = vsel %vm600_vm11, %v623_v10, %v625_v38  ;;  %1366 = vrot.lane.b32.xlu1 %v1350_v31, %s1455_s9 }
 0x2c1   :  { %644 = vst.msk [vmem:[#allocation2 + $0x28] sm:$0xff] %vm643_vm13, %v630_v39 }
 0x2c2   :  { %646 = vst.msk [vmem:[#allocation2 + $0x28] sm:$0xff] %vm645_vm14, %v1462_v15 }
 0x2c3   :  { %1381 = vrot.lane.b32.xlu0 %v1350_v31, %s1459_s13 }
 0x2c4   :  { %1376 = vrot.lane.b32.xlu1 %v1355_v36, %s1455_s9 }
 0x2c7   :  { %1391 = vrot.lane.b32.xlu0 %v1355_v36, %s1459_s13 }
 0x2c8   :  { %1386 = vrot.lane.b32.xlu1 %v1350_v31, %s1458_s12 }
 0x2c9   :  { %v1832_v22 = vld [vmem:[#allocation2 + $0x28] sm:$0xff] }
 0x2ca   :  { %v1420_v42 = vpack.i.bf16 %v1832_v22, %v1817_v37 }
 0x2cb   :  { %1401 = vrot.lane.b32.xlu0 %v1350_v31, %s1461_s15 }
 0x2cc   :  { %1396 = vrot.lane.b32.xlu1 %v1355_v36, %s1458_s12 }
 0x2cf   :  { %1411 = vrot.lane.b32.xlu0 %v1355_v36, %s1461_s15 }
 0x2d0   :  { %1406 = vrot.lane.b32.xlu1 %v1350_v31, %s1460_s14 }
 0x2d3   :  { %824 = vrot.lane.b32.xlu0 %v1802_v11, %s1463_s0 }
 0x2d4   :  { %822 = vrot.lane.b32.xlu1 %v626_v32, %s1463_s0 }
 0x2d7   :  { %1416 = vrot.lane.b32.xlu0 %v1420_v42, %s1456_s10 }
 0x2d8   :  { %1421 = vrot.lane.b32.xlu1 %v1420_v42, %s1457_s11 }
 0x2db   :  { %1431 = vrot.lane.b32.xlu0 %v1420_v42, %s1455_s9 }
 0x2dc   :  { %759 = vrot.lane.b32.xlu1 %v1817_v37, %s1458_s12 }
 0x2df   :  { %1436 = vrot.lane.b32.xlu0 %v1420_v42, %s1459_s13 }
 0x2e0   :  { %1426 = vrot.lane.b32.xlu1 %v1425_v23, %s1460_s14 }
 0x2e3   :  { %1441 = vrot.lane.b32.xlu0 %v1420_v42, %s1461_s15 }
 0x2e4   :  { %807 = vrot.lane.b32.xlu1 %v1832_v22, %s1460_s14 }
 0x2e7   :  { %761 = vrot.lane.b32.xlu0 %v1832_v22, %s1458_s12 }
 0x2e8   :  { %828 = vrot.lane.b32.xlu1 %v1817_v37, %s1463_s0 }
 0x2eb   :  { %826 = vrot.lane.b32.xlu0 %v1809_v35, %s1463_s0 }
 0x2ef   :  { %830 = vrot.lane.b32.xlu0 %v1832_v22, %s1463_s0 }
 0x326   :  { %v798_v24 = vpop.permute.xlu1 %797 }
 0x329   :  { %v1859_v16 = vpop.permute.xlu0 %1351 }
 0x32a   :  { %v1861_v18 = vpop.permute.xlu1 %820  ;;  %v1354_v44 = vunpack.i.h.bf16 %v1859_v16  ;;  %v1353_v45 = vunpack.i.l.bf16 %v1859_v16 }
 0x32c   :  { %v672_v47 = vsel %vm57_vm1, %v1353_v45, %v1354_v44 }
 0x32d   :  { %v1868_v48 = vpop.permute.xlu0 %1361  ;;  %v1189_v49 = vpack.c.bf16 %v672_v47, %v626_v32 }
 0x32e   :  { %v1870_v17 = vpop.permute.xlu1 %1356  ;;  %v1364_v54 = vunpack.i.h.bf16 %v1868_v48  ;;  %v1363_v56 = vunpack.i.l.bf16 %v1868_v48 }
 0x32f   :  { %v1358_v51 = vunpack.i.l.bf16 %v1870_v17  ;;  %1190 = vmatprep.subr.bf16.mxu1 %v1189_v49 }
 0x330   :  { %v695_v52 = vsel %vm81_vm2, %v1363_v56, %v1364_v54 }
 0x331   :  { %v671_v53 = vsel %vm57_vm1, %v1358_v51, %v1353_v45  ;;  %v1876_v57 = vpop.permute.xlu0 %1371 }
 0x332   :  { %v1191_v8 = vpack.c.bf16 %v671_v53, %v1799_v30  ;;  %v1879_v58 = vpop.permute.xlu1 %1366  ;;  %v1373_v61 = vunpack.i.l.bf16 %v1876_v57 }
 0x333   :  { %v1369_v59 = vunpack.i.h.bf16 %v1879_v58  ;;  %v1368_v60 = vunpack.i.l.bf16 %v1879_v58 }
 0x334   :  { %1192 = vmatpush1.bf16.msra.mxu1 %v1191_v8  ;;  %v694_v2 = vsel %vm81_vm2, %v1373_v61, %v1363_v56  ;;  %v1359_v8 = vunpack.i.h.bf16 %v1870_v17  ;;  %v1948_v17 = vld [vmem:[%s2047_s5] sm:$0xff] }
 0x335   :  { %v1884_v62 = vpop.permute.xlu0 %1381  ;;  %v718_v55 = vsel %vm105_vm0, %v1368_v60, %v1369_v59 }
 0x336   :  { %v1892_v1 = vpop.permute.xlu1 %1376  ;;  %v1193_v41 = vpack.c.bf16 %v718_v55, %v695_v52  ;;  %v1384_v4 = vunpack.i.h.bf16 %v1884_v62  ;;  %v1383_v5 = vunpack.i.l.bf16 %v1884_v62 }
 0x337   :  { %v1378_v0 = vunpack.i.l.bf16 %v1892_v1 }
 0x338   :  { %1194 = vmatprep.subr.bf16.mxu1 %v1193_v41  ;;  %v741_v25 = vsel %vm129_vm5, %v1383_v5, %v1384_v4  ;;  %v673_v41 = vsel %vm57_vm1, %v1354_v44, %v1359_v8  ;;  %v1374_v44 = vunpack.i.h.bf16 %v1876_v57 }
 0x339   :  { %v717_v3 = vsel %vm105_vm0, %v1378_v0, %v1368_v60  ;;  %v1899_v7 = vpop.permute.xlu0 %1391  ;;  %v1379_v0 = vunpack.i.h.bf16 %v1892_v1 }
 0x33a   :  { %v1195_v9 = vpack.c.bf16 %v717_v3, %v694_v2  ;;  %v1901_v6 = vpop.permute.xlu1 %1386  ;;  %v1393_v19 = vunpack.i.l.bf16 %v1899_v7  ;;  %v696_v58 = vsel %vm81_vm2, %v1364_v54, %v1374_v44 }
 0x33b   :  { %v1389_v12 = vunpack.i.h.bf16 %v1901_v6  ;;  %v1388_v13 = vunpack.i.l.bf16 %v1901_v6 }
 0x33c   :  { %1196 = vmatpush1.bf16.msra.mxu1 %v1195_v9  ;;  %v740_v29 = vsel %vm129_vm5, %v1393_v19, %v1383_v5 }
 0x33d   :  { %v1906_v21 = vpop.permute.xlu0 %1401  ;;  %v764_v14 = vsel %vm153_vm4, %v1388_v13, %v1389_v12 }
 0x33e   :  { %v1914_v26 = vpop.permute.xlu1 %1396  ;;  %v1197_v27 = vpack.c.bf16 %v764_v14, %v741_v25  ;;  %v1404_v32 = vunpack.i.h.bf16 %v1906_v21  ;;  %v1403_v33 = vunpack.i.l.bf16 %v1906_v21  ;;  %v1207_v14 = vpack.c.bf16 %v673_v41, %v1802_v11 }
 0x33f   :  { %v1398_v28 = vunpack.i.l.bf16 %v1914_v26 }
 0x340   :  { %1198 = vmatprep.subr.bf16.mxu1 %v1197_v27  ;;  %v787_v47 = vsel %vm177_vm7, %v1403_v33, %v1404_v32 }
 0x341   :  { %v763_v30 = vsel %vm153_vm4, %v1398_v28, %v1388_v13  ;;  %v1921_v31 = vpop.permute.xlu0 %1411 }
 0x342   :  { %v1199_v34 = vpack.c.bf16 %v763_v30, %v740_v29  ;;  %v1413_v36 = vunpack.i.l.bf16 %v1921_v31  ;;  %v1924_v10 = vpop.permute.xlu1 %1406 }
 0x343   :  { %v1409_v38 = vunpack.i.h.bf16 %v1924_v10  ;;  %v1408_v39 = vunpack.i.l.bf16 %v1924_v10 }
 0x344   :  { %v786_v42 = vsel %vm177_vm7, %v1413_v36, %v1403_v33  ;;  %1200 = vmatpush1.bf16.msra.mxu1 %v1199_v34 }
 0x345   :  { %v809_v23 = vsel %vm201_vm6, %v798_v24, %v1408_v39  ;;  %v1930_v45 = vpop.permute.xlu0 %824  ;;  %v810_v49 = vsel %vm201_vm6, %v1408_v39, %v1409_v38 }
 0x346   :  { %v1203_v51 = vpack.c.bf16 %v809_v23, %v786_v42  ;;  %v823_v56 = vpop.permute.xlu1 %822  ;;  %v1201_v53 = vpack.c.bf16 %v810_v49, %v787_v47  ;;  %v1414_v49 = vunpack.i.h.bf16 %v1921_v31 }
 0x347   :  { %v833_v24 = vsel %vm225_vm8, %v823_v56, %v1930_v45  ;;  %v832_v3 = vsel %vm225_vm8, %v1861_v18, %v823_v56  ;;  %v1399_v18 = vunpack.i.h.bf16 %v1914_v26 }
 0x348   :  { %1202 = vmatprep.subr.bf16.mxu1 %v1201_v53 }
 0x349   :  { %1204 = vmatpush1.bf16.msra.mxu1 %v1203_v51  ;;  %v1417_v60 = vpop.permute.xlu0 %1416  ;;  %v765_v23 = vsel %vm153_vm4, %v1389_v12, %v1399_v18 }
 0x34a   :  { %v1419_v61 = vunpack.i.h.bf16 %v1417_v60  ;;  %v1418_v52 = vunpack.i.l.bf16 %v1417_v60  ;;  %v1422_v55 = vpop.permute.xlu1 %1421  ;;  %864 = vmatprep.subr.mxu1 %v833_v24 }
 0x34b   :  { %v1424_v2 = vunpack.i.h.bf16 %v1422_v55  ;;  %v1423_v5 = vunpack.i.l.bf16 %v1422_v55 }
 0x34c   :  { %v1221_v9 = vpack.c.bf16 %v1419_v61, %v1832_v22  ;;  %v675_v13 = vsel %vm57_vm1, %v1418_v52, %v1419_v61  ;;  %v674_v16 = vsel %vm57_vm1, %v1359_v8, %v1418_v52  ;;  %v719_v22 = vsel %vm105_vm0, %v1369_v59, %v1379_v0 }
 0x34d   :  { %v1223_v1 = vpack.c.bf16 %v675_v13, %v1817_v37  ;;  %865 = vmatpush1.msra.mxu1 %v832_v3  ;;  %v1432_v19 = vpop.permute.xlu0 %1431  ;;  %v1205_v25 = vpack.c.bf16 %v674_v16, %v1809_v35  ;;  %v698_v37 = vsel %vm81_vm2, %v1423_v5, %v1424_v2  ;;  %v697_v35 = vsel %vm81_vm2, %v1374_v44, %v1423_v5 }
 0x34e   :  { %v1434_v27 = vunpack.i.h.bf16 %v1432_v19  ;;  %v1433_v28 = vunpack.i.l.bf16 %v1432_v19  ;;  %v760_v29 = vpop.permute.xlu1 %759  ;;  %1222 = vmatprep.subr.bf16.mxu1 %v1221_v9  ;;  %1162 = vmatmul.mubr.msk.f32.vlgmr.msra.gmra.mrb[2].mxu1 %vm844_vm15, %v1948_v17  ;;  %v1394_v59 = vunpack.i.h.bf16 %v1899_v7  ;;  %v1211_v36 = vpack.c.bf16 %v719_v22, %v696_v58 }
 0x34f   :  { %1206 = vmatprep.subr.bf16.mxu0 %v1205_v25  ;;  %1224 = vmatpush1.bf16.msra.mxu1 %v1223_v1 }
 0x350   :  { %v721_v11 = vsel %vm105_vm0, %v1433_v28, %v1434_v27  ;;  %v1225_v57 = vpack.c.bf16 %v1434_v27, %v1424_v2  ;;  %1208 = vmatpush1.bf16.msra.mxu0 %v1207_v14  ;;  %v720_v33 = vsel %vm105_vm0, %v1379_v0, %v1433_v28  ;;  %1054 = vmatprep.mubr.f32.mxu1 %v1462_v15 }
 0x351   :  { %v1227_v26 = vpack.c.bf16 %v721_v11, %v698_v37  ;;  %v1437_v30 = vpop.permute.xlu0 %1436  ;;  %v1209_v34 = vpack.c.bf16 %v720_v33, %v697_v35  ;;  %v766_v15 = vsel %vm153_vm4, %v1399_v18, %v760_v29  ;;  %v742_v7 = vsel %vm129_vm5, %v1384_v4, %v1394_v59 }
 0x352   :  { %v1438_v39 = vunpack.i.l.bf16 %v1437_v30  ;;  %v1427_v42 = vpop.permute.xlu1 %1426  ;;  %1226 = vmatprep.subr.bf16.mxu1 %v1225_v57  ;;  %v1215_v6 = vpack.c.bf16 %v765_v23, %v742_v7  ;;  %v1439_v53 = vunpack.i.h.bf16 %v1437_v30  ;;  %v788_v4 = vsel %vm177_vm7, %v1404_v32, %v1414_v49 }
 0x353   :  { %v1428_v47 = vunpack.i.l.bf16 %v1427_v42  ;;  %1210 = vmatprep.subr.bf16.mxu0 %v1209_v34  ;;  %1228 = vmatpush1.bf16.msra.mxu1 %v1227_v26  ;;  %v1429_v48 = vunpack.i.h.bf16 %v1427_v42 }
 0x354   :  { %1212 = vmatpush1.bf16.msra.mxu0 %v1211_v36  ;;  %v743_v54 = vsel %vm129_vm5, %v1394_v59, %v1438_v39  ;;  %v744_v41 = vsel %vm129_vm5, %v1438_v39, %v1439_v53 }
 0x355   :  { %v1442_v51 = vpop.permute.xlu0 %1441  ;;  %v1213_v56 = vpack.c.bf16 %v766_v15, %v743_v54  ;;  %v811_v8 = vsel %vm201_vm6, %v1409_v38, %v1428_v47  ;;  %v812_v62 = vsel %vm201_vm6, %v1428_v47, %v1429_v48 }
 0x356   :  { %v1443_v12 = vunpack.i.l.bf16 %v1442_v51  ;;  %v808_v60 = vpop.permute.xlu1 %807  ;;  %v1444_v24 = vunpack.i.h.bf16 %v1442_v51  ;;  %v1219_v55 = vpack.c.bf16 %v811_v8, %v788_v4 }
 0x357   :  { %1214 = vmatprep.subr.bf16.mxu0 %v1213_v56  ;;  %v813_v5 = vsel %vm201_vm6, %v1429_v48, %v808_v60 }
 0x358   :  { %1216 = vmatpush1.bf16.msra.mxu0 %v1215_v6  ;;  %v789_v61 = vsel %vm177_vm7, %v1414_v49, %v1443_v12  ;;  %v790_v2 = vsel %vm177_vm7, %v1443_v12, %v1444_v24  ;;  %v1233_v3 = vpack.c.bf16 %v808_v60, %v1444_v24  ;;  %v1125_v6 = vld [vmem:[%s2048_s7] sm:$0xff] }
 0x359   :  { %v762_v31 = vpop.permute.xlu0 %761  ;;  %v1217_v52 = vpack.c.bf16 %v812_v62, %v789_v61  ;;  %v1235_v16 = vpack.c.bf16 %v813_v5, %v790_v2 }
 0x35a   :  { %v767_v10 = vsel %vm153_vm4, %v760_v29, %v762_v31  ;;  %v1229_v38 = vpack.c.bf16 %v762_v31, %v1439_v53  ;;  %v829_v21 = vpop.permute.xlu1 %828 }
 0x35b   :  { %v1231_v0 = vpack.c.bf16 %v767_v10, %v744_v41  ;;  %1218 = vmatprep.subr.bf16.mxu0 %v1217_v52 }
 0x35c   :  { %1220 = vmatpush1.bf16.msra.mxu0 %v1219_v55  ;;  %1230 = vmatprep.subr.bf16.mxu1 %v1229_v38 }
 0x35d   :  { %v827_v9 = vpop.permute.xlu0 %826  ;;  %1232 = vmatpush1.bf16.msra.mxu1 %v1231_v0 }
 0x35e   :  { %v834_v32 = vsel %vm225_vm8, %v1930_v45, %v827_v9  ;;  %1234 = vmatprep.subr.bf16.mxu1 %v1233_v3  ;;  %v835_v13 = vsel %vm225_vm8, %v827_v9, %v829_v21 }
 0x35f   :  { %935 = vmatprep.subr.mxu0 %v835_v13 }
 0x360   :  { %936 = vmatpush1.msra.mxu0 %v834_v32 }
 0x361   :  { %v831_v44 = vpop.permute.xlu0 %830  ;;  %1163 = vmatmul.mubr.msk.f32.vlgmr.msra.gmra.mrb[4].mxu0 %vm844_vm15, %v1948_v17  ;;  %1236 = vmatpush1.bf16.msra.mxu1 %v1235_v16 }
 0x362   :  { %1006 = vmatprep.subr.mxu1 %v831_v44  ;;  %v836_v1 = vsel %vm225_vm8, %v829_v21, %v831_v44 }
 0x365   :  { %1007 = vmatpush1.msra.mxu1 %v836_v1 }
 0x366   :  { %1164 = vmatmul.mubr.msk.f32.vlgmr.msra.gmra.mrb[4].mxu1 %vm844_vm15, %v1948_v17 }
 0x421   :  { %v914_v19 = vpop.f32.mrb[2].mxu1 }
 0x422   :  { %v1061_v45 = vmul.f32 %v914_v19, %v1746_v20  ;;  %v1075_v25 = vmul.f32 %v914_v19, %v914_v19  ;;  %v916_v14 = vpop.f32.mrb[3].mxu1 }
 0x423   :  { %v1062_v27 = vmul.f32 %v916_v14, %v1748_v50  ;;  %v1076_v28 = vmul.f32 %v916_v14, %v916_v14 }
 0x424   :  { %v1081_v29 = vmul.f32 %v1075_v25, %v1746_v20 }
 0x425   :  { %v1067_v22 = vadd.f32 %v1062_v27, %v1061_v45  ;;  %v1082_v18 = vmul.f32 %v1076_v28, %v1748_v50 }
 0x427   :  { %v1087_v37 = vadd.f32 %v1082_v18, %v1081_v29 }
 0x434   :  { %v985_v35 = vpop.f32.mrb[4].mxu0 }
 0x435   :  { %v1063_v11 = vmul.f32 %v985_v35, %v1764_v63  ;;  %v1077_v57 = vmul.f32 %v985_v35, %v985_v35  ;;  %v987_v33 = vpop.f32.mrb[5].mxu0 }
 0x436   :  { %v1064_v17 = vmul.f32 %v987_v33, %v1766_v40  ;;  %v1078_v58 = vmul.f32 %v987_v33, %v987_v33 }
 0x437   :  { %v1068_v59 = vadd.f32 %v1067_v22, %v1063_v11  ;;  %v1083_v26 = vmul.f32 %v1077_v57, %v1764_v63 }
 0x438   :  { %v1084_v30 = vmul.f32 %v1078_v58, %v1766_v40 }
 0x439   :  { %v1069_v34 = vadd.f32 %v1068_v59, %v1064_v17  ;;  %v1056_v36 = vpop.f32.mrb[4].mxu1  ;;  %v1088_v20 = vadd.f32 %v1087_v37, %v1083_v26 }
 0x43a   :  { %v1065_v39 = vmul.f32 %v1056_v36, %v1768_v43  ;;  %v1079_v50 = vmul.f32 %v1056_v36, %v1056_v36  ;;  %v1058_v42 = vpop.f32.mrb[5].mxu1 }
 0x43b   :  { %v1066_v23 = vmul.f32 %v1058_v42, %v1770_v46  ;;  %v1080_v47 = vmul.f32 %v1058_v42, %v1058_v42  ;;  %v1089_v15 = vadd.f32 %v1088_v20, %v1084_v30 }
 0x43c   :  { %v1070_v48 = vadd.f32 %v1069_v34, %v1065_v39  ;;  %v1085_v54 = vmul.f32 %v1079_v50, %v1768_v43  ;;  %v1113_v43 = vld [vmem:[%s2049_s6] sm:$0xff] }
 0x43d   :  { %v1086_v7 = vmul.f32 %v1080_v47, %v1770_v46  ;;  %v1071_v63 = vsel %vm527_vm10, %v1066_v23, 0.0 }
 0x43e   :  { %v1072_v49 = vadd.f32 %v1071_v63, %v1070_v48  ;;  %v1090_v40 = vadd.f32 %v1089_v15, %v1085_v54 }
 0x43f   :  { %v1091_v51 = vsel %vm527_vm10, %v1086_v7, 0.0 }
 0x440   :  { %1073 = vadd.xlane.f32.xlu1 %v1072_v49  ;;  %v1092_v56 = vadd.f32 %v1091_v51, %v1090_v40 }
 0x442   :  { %1093 = vadd.xlane.f32.xlu0 %v1092_v56 }
 0x451   :  { %1128 = vperm.xlu1 %1349, %v1125_v6  }
 0x458   :  { %1116 = vperm.xlu0 %1348, %v1113_v43  }
 0x4cd   :  { %v1074_v46 = vpop.xlane.xlu1 %1073 }
 0x4ce   :  { %v1095_v53 = vmul.f32 0.001953125, %v1074_v46 }
 0x4cf   :  { %v1094_v12 = vpop.xlane.xlu0 %1093 }
 0x4d0   :  { %v1096_v8 = vmul.f32 0.001953125, %v1094_v12  ;;  %v1097_v60 = vmul.f32 %v1095_v53, %v1095_v53  ;;  %v1099_v62 = vsub.f32 %v914_v19, %v1095_v53  ;;  %v1100_v4 = vsub.f32 %v916_v14, %v1095_v53 }
 0x4d1   :  { %v1101_v31 = vsub.f32 %v985_v35, %v1095_v53  ;;  %v1102_v52 = vsub.f32 %v987_v33, %v1095_v53  ;;  %v1103_v41 = vsub.f32 %v1056_v36, %v1095_v53  ;;  %v1104_v10 = vsub.f32 %v1058_v42, %v1095_v53  ;;  %v1129_v1 = vpop.permute.xlu1 %1128 }
 0x4d2   :  { %v1098_v24 = vsub.f32 %v1096_v8, %v1097_v60 }
 0x4d4   :  { %v1105_v61 = vadd.f32 1e-05, %v1098_v24 }
 0x4d6   :  { %1453 = vrsqrt.f32 %v1105_v61 }
 0x4d7   :  { %v1117_v3 = vpop.permute.xlu0 %1116 }
 0x4e0   :  { %v1454_v55 = vpop.eup %1453 }
 0x4e1   :  { %v1107_v38 = vmul.f32 %v1454_v55, %v1099_v62  ;;  %v1108_v0 = vmul.f32 %v1454_v55, %v1100_v4  ;;  %v1109_v2 = vmul.f32 %v1454_v55, %v1101_v31  ;;  %v1110_v5 = vmul.f32 %v1454_v55, %v1102_v52 }
 0x4e2   :  { %v1111_v21 = vmul.f32 %v1454_v55, %v1103_v41  ;;  %v1112_v9 = vmul.f32 %v1454_v55, %v1104_v10 }
 0x4e3   :  { %v1119_v32 = vmul.f32 %v1117_v3, %v1107_v38  ;;  %v1120_v13 = vmul.f32 %v1117_v3, %v1108_v0  ;;  %v1121_v16 = vmul.f32 %v1117_v3, %v1109_v2  ;;  %v1122_v44 = vmul.f32 %v1117_v3, %v1110_v5 }
 0x4e4   :  { %v1123_v45 = vmul.f32 %v1117_v3, %v1111_v21  ;;  %v1124_v19 = vmul.f32 %v1117_v3, %v1112_v9 }
 0x4e5   :  { %v1131_v25 = vadd.f32 %v1129_v1, %v1119_v32  ;;  %v1132_v14 = vadd.f32 %v1129_v1, %v1120_v13  ;;  %v1133_v27 = vadd.f32 %v1129_v1, %v1121_v16  ;;  %v1134_v28 = vadd.f32 %v1129_v1, %v1122_v44 }
 0x4e6   :  { %v1135_v29 = vadd.f32 %v1129_v1, %v1123_v45  ;;  %v1136_v22 = vadd.f32 %v1129_v1, %v1124_v19 }
 0x4e7   :  { %v1137_v18 = vmax.f32 %v1131_v25, 0.0  ;;  %v1138_v37 = vmax.f32 %v1132_v14, 0.0  ;;  %v1139_v35 = vmax.f32 %v1133_v27, 0.0  ;;  %v1140_v11 = vmax.f32 %v1134_v28, 0.0 }
 0x4e8   :  { %v1141_v57 = vmax.f32 %v1135_v29, 0.0  ;;  %v1142_v33 = vmax.f32 %v1136_v22, 0.0 }
 0x4e9   :  { %1143 = vst [vmem:[%s2050_s8] sm:$0xff] %v1137_v18  ;;  %1144 = vst [vmem:[%s2050_s8 + $0x8] sm:$0xff] %v1138_v37 }
 0x4ea   :  { %1145 = vst [vmem:[%s2050_s8 + $0x10] sm:$0xff] %v1139_v35  ;;  %1146 = vst [vmem:[%s2050_s8 + $0x18] sm:$0xff] %v1140_v11 }
 0x4eb   :  { %1147 = vst [vmem:[%s2050_s8 + $0x20] sm:$0xff] %v1141_v57  ;;  %1148 = vst.msk [vmem:[%s2050_s8 + $0x28] sm:$0xff] %vm527_vm10, %v1142_v33 }

</bundles_post_ra>
